<compile_context>
chip_gen: v7x
topology: tpu7x:2x2x1
jax: 0.10.0
libtpu: 0.0.40
codegen_flags: <defaults>
</compile_context>

<pallas_src>
import functools
import math

import jax
import jax.numpy as jnp
from jax import lax
from jax.experimental import pallas as pl
from jax.experimental.pallas import tpu as pltpu

THRESHOLD = 0.5
NEG_POS_RATIO = 3
ALPHA = 1.0


# ----------------------------------------------------------------------------
# Fused kernel: matching + encoding + CE + L1 + hard-negative mining for a
# block of nb images per grid step.
# ----------------------------------------------------------------------------
def _multibox_fused_kernel(boxes_ref,     # (nb, n_obj, 4) f32  gt boxes (xyxy)
                           payload_ref,   # (nb, 8, n_pad) f32  [cx,cy,5logw,5logh,label,0,0,0]
                           pxy_ref,       # (4, P) f32          priors in xyxy
                           enc_ref,       # (2, 4, P) f32       [scale rows ; offset rows]
                           plocs_ref,     # (nb, 4, P) f32      predicted locs, coord-major
                           pscores_ref,   # (nb, C, P) f32      predicted scores, class-major
                           stats_ref,     # (1, nb, 128) f32    [conf_pos, conf_hard, loc_sum, n_pos,...]
                           *, threshold, neg_pos_ratio):
    nb = boxes_ref.shape[0]
    n_obj = boxes_ref.shape[1]
    n_pad = payload_ref.shape[2]
    P = pxy_ref.shape[1]
    C = pscores_ref.shape[1]
    f32 = jnp.float32

    # ---- constants shared by every image in the block (hoisted) ----
    pxy = pxy_ref[...]
    px0, py0, px1, py1 = pxy[0:1, :], pxy[1:2, :], pxy[2:3, :], pxy[3:4, :]
    area_p = (px1 - px0) * (py1 - py0)                          # (1, P)
    enc_scale = enc_ref[0]                                      # (4, P)
    enc_off = enc_ref[1]                                        # (4, P)
    obj_iota = lax.broadcasted_iota(jnp.int32, (n_obj, P), 0)
    pri_iota = lax.broadcasted_iota(jnp.int32, (n_obj, P), 1)
    obj_iota_pad = lax.broadcasted_iota(jnp.int32, (n_pad, P), 0)
    cls_iota = lax.broadcasted_iota(jnp.int32, (C, P), 0).astype(f32)

    lab_rows = []
    ldiff_rows = []
    conf_rows = []
    for i in range(nb):
        boxes = boxes_ref[i]                                    # (n_obj, 4)
        bx0, by0 = boxes[:, 0:1], boxes[:, 1:2]
        bx1, by1 = boxes[:, 2:3], boxes[:, 3:4]

        # Jaccard overlap (n_obj, P); exact divide (union >= prior area > 0).
        iw = jnp.maximum(jnp.minimum(bx1, px1) - jnp.maximum(bx0, px0), 0.0)
        ih = jnp.maximum(jnp.minimum(by1, py1) - jnp.maximum(by0, py0), 0.0)
        inter = iw * ih
        area_o = (bx1 - bx0) * (by1 - by0)
        overlap = inter / (area_o + area_p - inter)             # (n_obj, P)

        # best object per prior / best prior per object (first index on ties)
        ov_prior = jnp.max(overlap, axis=0, keepdims=True)                 # (1, P)
        obj_for_prior = jnp.min(jnp.where(overlap == ov_prior, obj_iota, n_obj),
                                axis=0, keepdims=True)                     # (1, P)
        ov_obj = jnp.max(overlap, axis=1, keepdims=True)                   # (n_obj, 1)
        prior_for_obj = jnp.min(jnp.where(overlap == ov_obj, pri_iota, P),
                                axis=1, keepdims=True)                     # (n_obj, 1)

        # force-assign each object's best prior (last object wins on
        # collisions, matching the PyTorch scatter) and set its overlap to 1.
        force = pri_iota == prior_for_obj                                  # (n_obj, P)
        forced_obj = jnp.max(jnp.where(force, obj_iota, -1), axis=0, keepdims=True)
        is_forced = forced_obj >= 0
        obj_for_prior = jnp.where(is_forced, forced_obj, obj_for_prior)
        ov_prior = jnp.where(is_forced, 1.0, ov_prior)

        # one-hot MXU gather of [cx, cy, 5logw, 5logh, label] per prior (exact).
        onehot = (obj_iota_pad == obj_for_prior).astype(f32)               # (n_pad, P)
        gathered = jnp.dot(payload_ref[i], onehot,
                           preferred_element_type=f32,
                           precision=lax.Precision.HIGHEST)                # (8, P)
        lab_i = jnp.where(ov_prior < threshold, 0.0, gathered[4:5, :])     # (1, P)

        # gcxgcy encode (fused multiply-add) + L1 row sum over the 4 coords.
        true_locs = gathered[0:4, :] * enc_scale + enc_off                 # (4, P)
        ldiff_i = jnp.sum(jnp.abs(plocs_ref[i] - true_locs),
                          axis=0, keepdims=True)                           # (1, P)

        # per-prior cross-entropy (classes on sublanes, priors on lanes).
        st = pscores_ref[i]                                                # (C, P)
        mx = jnp.max(st, axis=0, keepdims=True)
        lse = mx + jnp.log(jnp.sum(jnp.exp(st - mx), axis=0, keepdims=True))
        picked = jnp.sum(jnp.where(jnp.abs(cls_iota - lab_i) < 0.5, st, 0.0),
                         axis=0, keepdims=True)
        conf_rows.append(lse - picked)                                     # (1, P)
        lab_rows.append(lab_i)
        ldiff_rows.append(ldiff_i)

    # ---- batched tail: images on the sublane axis, priors on lanes ----
    lab = jnp.concatenate(lab_rows, axis=0)          # (nb, P)
    ldiff = jnp.concatenate(ldiff_rows, axis=0)      # (nb, P)
    conf_all = jnp.concatenate(conf_rows, axis=0)    # (nb, P)

    pos = lab > 0.5
    posf = pos.astype(f32)

    # merged lane reductions: [n_pos | loc_sum | conf_pos]
    stacked = jnp.concatenate([posf, ldiff * posf, conf_all * posf], axis=0)
    sums = jnp.sum(stacked, axis=1, keepdims=True)   # (3*nb, 1)
    n_pos = sums[0:nb]
    loc_sum = sums[nb:2 * nb]
    conf_pos = sums[2 * nb:3 * nb]

    # ---- hard-negative mining: exact per-image sum of top-k of conf_neg.
    # k = min(neg_pos_ratio * n_pos, P).  conf_neg >= 0, so float ordering ==
    # int32 bit-pattern ordering; a 31-step radix select finds the exact k-th
    # largest value and ties are settled by the (k - cnt_gt) * vk term.
    conf_neg = jnp.where(pos, 0.0, conf_all)         # (nb, P), >= 0
    kf = jnp.minimum(jnp.float32(neg_pos_ratio) * n_pos, jnp.float32(P))  # (nb, 1)
    bits = pltpu.bitcast(conf_neg, jnp.int32)        # (nb, P)

    def radix_step(_, carry):
        prefix, bitv = carry
        cand = prefix | bitv                                              # (nb, 1)
        cnt = jnp.sum((bits >= cand).astype(f32), axis=1, keepdims=True)  # (nb, 1)
        prefix = jnp.where(cnt >= kf, cand, prefix)
        return prefix, jnp.right_shift(bitv, 1)

    prefix, _ = lax.fori_loop(
        0, 31, radix_step,
        (jnp.zeros((nb, 1), jnp.int32), jnp.full((nb, 1), 1 << 30, jnp.int32)))

    gt = bits > prefix                                                    # (nb, P)
    vk = jnp.max(jnp.where(bits == prefix, conf_neg, 0.0), axis=1, keepdims=True)
    stacked2 = jnp.concatenate([gt.astype(f32), jnp.where(gt, conf_neg, 0.0)], axis=0)
    sums2 = jnp.sum(stacked2, axis=1, keepdims=True)                      # (2*nb, 1)
    cnt_gt = sums2[0:nb]
    sum_gt = sums2[nb:2 * nb]
    conf_hard = jnp.where(kf > 0.5, sum_gt + (kf - cnt_gt) * vk, 0.0)

    # ---- pack the four per-image scalars into a lane-dense (nb, 128) tile ----
    lane = lax.broadcasted_iota(jnp.int32, (nb, 128), 1)
    out_row = (jnp.where(lane == 0, conf_pos, 0.0)
               + jnp.where(lane == 1, conf_hard, 0.0)
               + jnp.where(lane == 2, loc_sum, 0.0)
               + jnp.where(lane == 3, n_pos, 0.0))
    stats_ref[0] = out_row


# ----------------------------------------------------------------------------
# Wrapper
# ----------------------------------------------------------------------------
def cxcy_to_xy(cxcy):
    return jnp.concatenate([cxcy[:, :2] - cxcy[:, 2:] / 2.0,
                            cxcy[:, :2] + cxcy[:, 2:] / 2.0], axis=1)


def multibox_loss(predicted_locs, predicted_scores, boxes_xy, labels,
                  priors_cxcy, threshold=THRESHOLD,
                  neg_pos_ratio=NEG_POS_RATIO, alpha=ALPHA):
    """predicted_locs:(B,P,4)  predicted_scores:(B,P,C)
       boxes_xy:(B,n_obj,4)    labels:(B,n_obj)   priors_cxcy:(P,4)"""
    B, P, _ = predicted_locs.shape
    C = predicted_scores.shape[2]
    n_obj = boxes_xy.shape[1]
    f32 = jnp.float32

    # images per grid step (sublane batching of all per-prior row work)
    nb = min(8, B)
    n_blocks = (B + nb - 1) // nb
    B_pad = n_blocks * nb

    boxes_xy = boxes_xy.astype(f32)
    labels_f = labels.astype(f32)
    locs = predicted_locs.astype(f32)
    scores = predicted_scores.astype(f32)
    if B_pad != B:
        pad = B_pad - B   # padded images carry label 0 -> contribute 0 to all stats
        boxes_xy = jnp.concatenate([boxes_xy, jnp.zeros((pad, n_obj, 4), f32)], 0)
        labels_f = jnp.concatenate([labels_f, jnp.zeros((pad, n_obj), f32)], 0)
        locs = jnp.concatenate([locs, jnp.zeros((pad, P, 4), f32)], 0)
        scores = jnp.concatenate([scores, jnp.zeros((pad, P, C), f32)], 0)

    # single wrapper-side transposes -> lane-dense kernel blocks
    locs_t = jnp.transpose(locs, (0, 2, 1))        # (B_pad, 4, P)
    scores_t = jnp.transpose(scores, (0, 2, 1))    # (B_pad, C, P)

    priors_cxcy = priors_cxcy.astype(f32)
    priors_xy_t = cxcy_to_xy(priors_cxcy).T        # (4, P)
    p_cx, p_cy = priors_cxcy[:, 0], priors_cxcy[:, 1]
    p_w, p_h = priors_cxcy[:, 2], priors_cxcy[:, 3]
    ones = jnp.ones_like(p_w)
    enc_scale = jnp.stack([10.0 / p_w, 10.0 / p_h, ones, ones], axis=0)       # (4, P)
    enc_off = jnp.stack([-10.0 * p_cx / p_w, -10.0 * p_cy / p_h,
                         -5.0 * jnp.log(p_w), -5.0 * jnp.log(p_h)], axis=0)   # (4, P)
    enc = jnp.stack([enc_scale, enc_off], axis=0)                             # (2, 4, P)

    # MXU gather payload: rows [cx, cy, 5*log(w), 5*log(h), label, 0, 0, 0].
    # The object axis is zero-padded to a multiple of 8; padded columns are
    # never selected by the one-hot.  w,h clamped so the log stays finite.
    n_pad = max(8, ((n_obj + 7) // 8) * 8)
    x0, y0 = boxes_xy[..., 0], boxes_xy[..., 1]
    x1, y1 = boxes_xy[..., 2], boxes_xy[..., 3]
    w = jnp.maximum(x1 - x0, 1e-8)
    h = jnp.maximum(y1 - y0, 1e-8)
    payload = jnp.zeros((B_pad, 8, n_pad), f32)
    payload = payload.at[:, 0, :n_obj].set(0.5 * (x0 + x1))
    payload = payload.at[:, 1, :n_obj].set(0.5 * (y0 + y1))
    payload = payload.at[:, 2, :n_obj].set(5.0 * jnp.log(w))
    payload = payload.at[:, 3, :n_obj].set(5.0 * jnp.log(h))
    payload = payload.at[:, 4, :n_obj].set(labels_f)

    kernel = functools.partial(_multibox_fused_kernel,
                               threshold=float(threshold),
                               neg_pos_ratio=float(neg_pos_ratio))

    stats = pl.pallas_call(
        kernel,
        out_shape=jax.ShapeDtypeStruct((n_blocks, nb, 128), f32),
        grid=(n_blocks,),
        in_specs=[
            pl.BlockSpec((nb, n_obj, 4), lambda b: (b, 0, 0)),   # gt boxes (xyxy)
            pl.BlockSpec((nb, 8, n_pad), lambda b: (b, 0, 0)),   # gather payload
            pl.BlockSpec((4, P), lambda b: (0, 0)),              # priors xyxy
            pl.BlockSpec((2, 4, P), lambda b: (0, 0, 0)),        # encode scale/offset
            pl.BlockSpec((nb, 4, P), lambda b: (b, 0, 0)),       # pred locs (coord-major)
            pl.BlockSpec((nb, C, P), lambda b: (b, 0, 0)),       # pred scores (class-major)
        ],
        out_specs=pl.BlockSpec((1, nb, 128), lambda b: (b, 0, 0)),
        compiler_params=pltpu.CompilerParams(
            dimension_semantics=("parallel",),
            vmem_limit_bytes=48 * 1024 * 1024),
    )(boxes_xy, payload, priors_xy_t, enc, locs_t, scores_t)

    conf_pos_sum = jnp.sum(stats[..., 0])
    conf_hard_sum = jnp.sum(stats[..., 1])
    loc_abs_sum = jnp.sum(stats[..., 2])
    n_pos_total = jnp.sum(stats[..., 3])

    # NOTE: if the whole batch has zero positive priors this divides by zero,
    # exactly like the PyTorch reference.
    conf_loss = (conf_hard_sum + conf_pos_sum) / n_pos_total
    loc_loss = loc_abs_sum / (n_pos_total * 4.0)   # nn.L1Loss mean over positives
    return conf_loss + alpha * loc_loss


# ----------------------------------------------------------------------------
if __name__ == "__main__":
    B, P, C, N_OBJ = 2, 256, 8, 3

    # deterministic priors: 8x8 grid, 2 scales x 2 aspect ratios = 256 priors
    pri = []
    fm = 8
    for i in range(fm):
        for j in range(fm):
            cx = (j + 0.5) / fm
            cy = (i + 0.5) / fm
            for s in (0.2, 0.35):
                for r in (1.0, 2.0):
                    pri.append([cx, cy, s * math.sqrt(r), s / math.sqrt(r)])
    priors_cxcy = jnp.array(pri, dtype=jnp.float32)        # (256, 4)

    key = jax.random.PRNGKey(0)
    k1, k2, k3, k4, k5 = jax.random.split(key, 5)
    centers = jax.random.uniform(k1, (B, N_OBJ, 2), minval=0.25, maxval=0.75)
    sizes = jax.random.uniform(k2, (B, N_OBJ, 2), minval=0.15, maxval=0.4)
    boxes_xy = jnp.concatenate([centers - sizes / 2.0,
                                centers + sizes / 2.0], axis=-1)  # (B, N_OBJ, 4)
    labels = jax.random.randint(k3, (B, N_OBJ), 1, C).astype(jnp.int32)
    predicted_locs = jax.random.normal(k4, (B, P, 4), dtype=jnp.float32)
    predicted_scores = jax.random.normal(k5, (B, P, C), dtype=jnp.float32)

    loss = multibox_loss(predicted_locs, predicted_scores,
                         boxes_xy, labels, priors_cxcy)
    loss = jax.block_until_ready(loss)
    assert jnp.isfinite(loss), f"loss is not finite: {loss}"
    print("KERNEL_OK")
</pallas_src>

<mosaic_0001>
module attributes {stable_mosaic.version = 11 : i64} {
  func.func @_multibox_fused_kernel(%arg0: i32, %arg1: memref<2x3x4xf32, #tpu.memory_space<vmem>>, %arg2: memref<2x8x8xf32, #tpu.memory_space<vmem>>, %arg3: memref<4x256xf32, #tpu.memory_space<vmem>>, %arg4: memref<2x4x256xf32, #tpu.memory_space<vmem>>, %arg5: memref<2x4x256xf32, #tpu.memory_space<vmem>>, %arg6: memref<2x8x256xf32, #tpu.memory_space<vmem>>, %arg7: memref<1x2x128xf32, #tpu.memory_space<vmem>>) attributes {dimension_semantics = [#tpu.dimension_semantics<parallel>], iteration_bounds = array<i64: 1>, scalar_prefetch = 0 : i64, scratch_operands = 0 : i64, tpu.core_type = #tpu.core_type<tc>, window_params = [{transform_indices = @transform_0, window_bounds = array<i64: 2, 3, 4>}, {transform_indices = @transform_1, window_bounds = array<i64: 2, 8, 8>}, {pipeline_mode = #tpu.pipeline_mode<synchronous>, transform_indices = @transform_2, window_bounds = array<i64: 4, 256>}, {pipeline_mode = #tpu.pipeline_mode<synchronous>, transform_indices = @transform_3, window_bounds = array<i64: 2, 4, 256>}, {transform_indices = @transform_4, window_bounds = array<i64: 2, 4, 256>}, {transform_indices = @transform_5, window_bounds = array<i64: 2, 8, 256>}, {transform_indices = @transform_6, window_bounds = array<i64: 1, 2, 128>}]} {
    %c0 = arith.constant 0 : index
    %c0_0 = arith.constant 0 : index
    %0 = vector.load %arg3[%c0, %c0_0] : memref<4x256xf32, #tpu.memory_space<vmem>>, vector<4x256xf32>
    %1 = vector.extract_strided_slice %0 {offsets = [0, 0], sizes = [1, 256], strides = [1, 1]} : vector<4x256xf32> to vector<1x256xf32>
    %2 = vector.extract_strided_slice %0 {offsets = [1, 0], sizes = [1, 256], strides = [1, 1]} : vector<4x256xf32> to vector<1x256xf32>
    %3 = vector.extract_strided_slice %0 {offsets = [2, 0], sizes = [1, 256], strides = [1, 1]} : vector<4x256xf32> to vector<1x256xf32>
    %4 = vector.extract_strided_slice %0 {offsets = [3, 0], sizes = [1, 256], strides = [1, 1]} : vector<4x256xf32> to vector<1x256xf32>
    %5 = arith.subf %3, %1 : vector<1x256xf32>
    %6 = arith.subf %4, %2 : vector<1x256xf32>
    %7 = arith.mulf %5, %6 : vector<1x256xf32>
    %c0_1 = arith.constant 0 : index
    %c0_2 = arith.constant 0 : index
    %c0_3 = arith.constant 0 : index
    %8 = vector.load %arg4[%c0_1, %c0_2, %c0_3] : memref<2x4x256xf32, #tpu.memory_space<vmem>>, vector<1x4x256xf32>
    %9 = vector.shape_cast %8 : vector<1x4x256xf32> to vector<4x256xf32>
    %c1 = arith.constant 1 : index
    %c0_4 = arith.constant 0 : index
    %c0_5 = arith.constant 0 : index
    %10 = vector.load %arg4[%c1, %c0_4, %c0_5] : memref<2x4x256xf32, #tpu.memory_space<vmem>>, vector<1x4x256xf32>
    %11 = vector.shape_cast %10 : vector<1x4x256xf32> to vector<4x256xf32>
    %12 = tpu.iota {dimensions = array<i32: 0>} : vector<3x256xi32>
    %13 = tpu.iota {dimensions = array<i32: 1>} : vector<3x256xi32>
    %14 = tpu.iota {dimensions = array<i32: 0>} : vector<8x256xi32>
    %15 = tpu.iota {dimensions = array<i32: 0>} : vector<8x256xi32>
    %16 = arith.sitofp %15 : vector<8x256xi32> to vector<8x256xf32>
    %c0_6 = arith.constant 0 : index
    %c0_7 = arith.constant 0 : index
    %c0_8 = arith.constant 0 : index
    %17 = vector.load %arg1[%c0_6, %c0_7, %c0_8] : memref<2x3x4xf32, #tpu.memory_space<vmem>>, vector<1x3x4xf32>
    %18 = vector.shape_cast %17 : vector<1x3x4xf32> to vector<3x4xf32>
    %19 = vector.extract_strided_slice %18 {offsets = [0, 0], sizes = [3, 1], strides = [1, 1]} : vector<3x4xf32> to vector<3x1xf32>
    %20 = vector.extract_strided_slice %18 {offsets = [0, 1], sizes = [3, 1], strides = [1, 1]} : vector<3x4xf32> to vector<3x1xf32>
    %21 = vector.extract_strided_slice %18 {offsets = [0, 2], sizes = [3, 1], strides = [1, 1]} : vector<3x4xf32> to vector<3x1xf32>
    %22 = vector.extract_strided_slice %18 {offsets = [0, 3], sizes = [3, 1], strides = [1, 1]} : vector<3x4xf32> to vector<3x1xf32>
    %23 = vector.broadcast %21 : vector<3x1xf32> to vector<3x256xf32>
    %24 = vector.broadcast %3 : vector<1x256xf32> to vector<3x256xf32>
    %25 = arith.minimumf %23, %24 : vector<3x256xf32>
    %26 = vector.broadcast %19 : vector<3x1xf32> to vector<3x256xf32>
    %27 = vector.broadcast %1 : vector<1x256xf32> to vector<3x256xf32>
    %28 = arith.maximumf %26, %27 : vector<3x256xf32>
    %29 = arith.subf %25, %28 : vector<3x256xf32>
    %cst = arith.constant 0.000000e+00 : f32
    %30 = vector.broadcast %cst : f32 to vector<3x256xf32>
    %31 = arith.maximumf %29, %30 : vector<3x256xf32>
    %32 = vector.broadcast %22 : vector<3x1xf32> to vector<3x256xf32>
    %33 = vector.broadcast %4 : vector<1x256xf32> to vector<3x256xf32>
    %34 = arith.minimumf %32, %33 : vector<3x256xf32>
    %35 = vector.broadcast %20 : vector<3x1xf32> to vector<3x256xf32>
    %36 = vector.broadcast %2 : vector<1x256xf32> to vector<3x256xf32>
    %37 = arith.maximumf %35, %36 : vector<3x256xf32>
    %38 = arith.subf %34, %37 : vector<3x256xf32>
    %cst_9 = arith.constant 0.000000e+00 : f32
    %39 = vector.broadcast %cst_9 : f32 to vector<3x256xf32>
    %40 = arith.maximumf %38, %39 : vector<3x256xf32>
    %41 = arith.mulf %31, %40 : vector<3x256xf32>
    %42 = arith.subf %21, %19 : vector<3x1xf32>
    %43 = arith.subf %22, %20 : vector<3x1xf32>
    %44 = arith.mulf %42, %43 : vector<3x1xf32>
    %45 = vector.broadcast %44 : vector<3x1xf32> to vector<3x256xf32>
    %46 = vector.broadcast %7 : vector<1x256xf32> to vector<3x256xf32>
    %47 = arith.addf %45, %46 : vector<3x256xf32>
    %48 = arith.subf %47, %41 : vector<3x256xf32>
    %49 = arith.divf %41, %48 : vector<3x256xf32>
    %cst_10 = arith.constant dense<0xFF800000> : vector<256xf32>
    %50 = vector.multi_reduction <maximumf>, %49, %cst_10 [0] : vector<3x256xf32> to vector<256xf32>
    %51 = vector.shape_cast %50 : vector<256xf32> to vector<1x256xf32>
    %52 = vector.broadcast %51 : vector<1x256xf32> to vector<3x256xf32>
    %53 = arith.cmpf oeq, %49, %52 : vector<3x256xf32>
    %c3_i32 = arith.constant 3 : i32
    %54 = vector.broadcast %c3_i32 : i32 to vector<3x256xi32>
    %55 = arith.select %53, %12, %54 : vector<3x256xi1>, vector<3x256xi32>
    %cst_11 = arith.constant dense<2147483647> : vector<256xi32>
    %56 = vector.multi_reduction <minsi>, %55, %cst_11 [0] : vector<3x256xi32> to vector<256xi32>
    %57 = vector.shape_cast %56 : vector<256xi32> to vector<1x256xi32>
    %cst_12 = arith.constant dense<0xFF800000> : vector<3xf32>
    %58 = vector.multi_reduction <maximumf>, %49, %cst_12 [1] : vector<3x256xf32> to vector<3xf32>
    %59 = vector.shape_cast %58 : vector<3xf32> to vector<3x1xf32>
    %60 = vector.broadcast %59 : vector<3x1xf32> to vector<3x256xf32>
    %61 = arith.cmpf oeq, %49, %60 : vector<3x256xf32>
    %c256_i32 = arith.constant 256 : i32
    %62 = vector.broadcast %c256_i32 : i32 to vector<3x256xi32>
    %63 = arith.select %61, %13, %62 : vector<3x256xi1>, vector<3x256xi32>
    %cst_13 = arith.constant dense<2147483647> : vector<3xi32>
    %64 = vector.multi_reduction <minsi>, %63, %cst_13 [1] : vector<3x256xi32> to vector<3xi32>
    %65 = vector.shape_cast %64 : vector<3xi32> to vector<3x1xi32>
    %66 = vector.broadcast %65 : vector<3x1xi32> to vector<3x256xi32>
    %67 = arith.cmpi eq, %13, %66 : vector<3x256xi32>
    %c-1_i32 = arith.constant -1 : i32
    %68 = vector.broadcast %c-1_i32 : i32 to vector<3x256xi32>
    %69 = arith.select %67, %12, %68 : vector<3x256xi1>, vector<3x256xi32>
    %cst_14 = arith.constant dense<-2147483648> : vector<256xi32>
    %70 = vector.multi_reduction <maxsi>, %69, %cst_14 [0] : vector<3x256xi32> to vector<256xi32>
    %71 = vector.shape_cast %70 : vector<256xi32> to vector<1x256xi32>
    %c0_i32 = arith.constant 0 : i32
    %72 = vector.broadcast %c0_i32 : i32 to vector<1x256xi32>
    %73 = arith.cmpi sge, %71, %72 : vector<1x256xi32>
    %74 = arith.select %73, %71, %57 : vector<1x256xi1>, vector<1x256xi32>
    %cst_15 = arith.constant 1.000000e+00 : f32
    %75 = vector.broadcast %cst_15 : f32 to vector<1x256xf32>
    %76 = arith.select %73, %75, %51 : vector<1x256xi1>, vector<1x256xf32>
    %77 = vector.broadcast %74 : vector<1x256xi32> to vector<8x256xi32>
    %78 = arith.cmpi eq, %14, %77 : vector<8x256xi32>
    %79 = arith.extui %78 : vector<8x256xi1> to vector<8x256xi32>
    %80 = arith.sitofp %79 : vector<8x256xi32> to vector<8x256xf32>
    %c0_16 = arith.constant 0 : index
    %c0_17 = arith.constant 0 : index
    %c0_18 = arith.constant 0 : index
    %81 = vector.load %arg2[%c0_16, %c0_17, %c0_18] : memref<2x8x8xf32, #tpu.memory_space<vmem>>, vector<1x8x8xf32>
    %82 = vector.shape_cast %81 : vector<1x8x8xf32> to vector<8x8xf32>
    %cst_19 = arith.constant dense<0.000000e+00> : vector<8x256xf32>
    %83 = tpu.matmul %82, %80, %cst_19 {dimension_numbers = #tpu.dot_dimension_numbers<[1], [0], [0], [1], [0, 0, 1, 1], [], []>, precision = #tpu.contract_precision<fp32>} : vector<8x8xf32>, vector<8x256xf32>, vector<8x256xf32> -> vector<8x256xf32>
    %cst_20 = arith.constant 5.000000e-01 : f32
    %84 = vector.broadcast %cst_20 : f32 to vector<1x256xf32>
    %85 = arith.cmpf olt, %76, %84 : vector<1x256xf32>
    %86 = vector.extract_strided_slice %83 {offsets = [4, 0], sizes = [1, 256], strides = [1, 1]} : vector<8x256xf32> to vector<1x256xf32>
    %cst_21 = arith.constant 0.000000e+00 : f32
    %87 = vector.broadcast %cst_21 : f32 to vector<1x256xf32>
    %88 = arith.select %85, %87, %86 : vector<1x256xi1>, vector<1x256xf32>
    %89 = vector.extract_strided_slice %83 {offsets = [0, 0], sizes = [4, 256], strides = [1, 1]} : vector<8x256xf32> to vector<4x256xf32>
    %90 = arith.mulf %89, %9 : vector<4x256xf32>
    %91 = arith.addf %90, %11 : vector<4x256xf32>
    %c0_22 = arith.constant 0 : index
    %c0_23 = arith.constant 0 : index
    %c0_24 = arith.constant 0 : index
    %92 = vector.load %arg5[%c0_22, %c0_23, %c0_24] : memref<2x4x256xf32, #tpu.memory_space<vmem>>, vector<1x4x256xf32>
    %93 = vector.shape_cast %92 : vector<1x4x256xf32> to vector<4x256xf32>
    %94 = arith.subf %93, %91 : vector<4x256xf32>
    %95 = math.absf %94 : vector<4x256xf32>
    %cst_25 = arith.constant dense<0.000000e+00> : vector<256xf32>
    %96 = vector.multi_reduction <add>, %95, %cst_25 [0] : vector<4x256xf32> to vector<256xf32>
    %97 = vector.shape_cast %96 : vector<256xf32> to vector<1x256xf32>
    %c0_26 = arith.constant 0 : index
    %c0_27 = arith.constant 0 : index
    %c0_28 = arith.constant 0 : index
    %98 = vector.load %arg6[%c0_26, %c0_27, %c0_28] : memref<2x8x256xf32, #tpu.memory_space<vmem>>, vector<1x8x256xf32>
    %99 = vector.shape_cast %98 : vector<1x8x256xf32> to vector<8x256xf32>
    %cst_29 = arith.constant dense<0xFF800000> : vector<256xf32>
    %100 = vector.multi_reduction <maximumf>, %99, %cst_29 [0] : vector<8x256xf32> to vector<256xf32>
    %101 = vector.shape_cast %100 : vector<256xf32> to vector<1x256xf32>
    %102 = vector.broadcast %101 : vector<1x256xf32> to vector<8x256xf32>
    %103 = arith.subf %99, %102 : vector<8x256xf32>
    %104 = math.exp %103 : vector<8x256xf32>
    %cst_30 = arith.constant dense<0.000000e+00> : vector<256xf32>
    %105 = vector.multi_reduction <add>, %104, %cst_30 [0] : vector<8x256xf32> to vector<256xf32>
    %106 = vector.shape_cast %105 : vector<256xf32> to vector<1x256xf32>
    %107 = math.log %106 : vector<1x256xf32>
    %108 = arith.addf %101, %107 : vector<1x256xf32>
    %109 = vector.broadcast %88 : vector<1x256xf32> to vector<8x256xf32>
    %110 = arith.subf %16, %109 : vector<8x256xf32>
    %111 = math.absf %110 : vector<8x256xf32>
    %cst_31 = arith.constant 5.000000e-01 : f32
    %112 = vector.broadcast %cst_31 : f32 to vector<8x256xf32>
    %113 = arith.cmpf olt, %111, %112 : vector<8x256xf32>
    %cst_32 = arith.constant 0.000000e+00 : f32
    %114 = vector.broadcast %cst_32 : f32 to vector<8x256xf32>
    %115 = arith.select %113, %99, %114 : vector<8x256xi1>, vector<8x256xf32>
    %cst_33 = arith.constant dense<0.000000e+00> : vector<256xf32>
    %116 = vector.multi_reduction <add>, %115, %cst_33 [0] : vector<8x256xf32> to vector<256xf32>
    %117 = vector.shape_cast %116 : vector<256xf32> to vector<1x256xf32>
    %118 = arith.subf %108, %117 : vector<1x256xf32>
    %c1_34 = arith.constant 1 : index
    %c0_35 = arith.constant 0 : index
    %c0_36 = arith.constant 0 : index
    %119 = vector.load %arg1[%c1_34, %c0_35, %c0_36] : memref<2x3x4xf32, #tpu.memory_space<vmem>>, vector<1x3x4xf32>
    %120 = vector.shape_cast %119 : vector<1x3x4xf32> to vector<3x4xf32>
    %121 = vector.extract_strided_slice %120 {offsets = [0, 0], sizes = [3, 1], strides = [1, 1]} : vector<3x4xf32> to vector<3x1xf32>
    %122 = vector.extract_strided_slice %120 {offsets = [0, 1], sizes = [3, 1], strides = [1, 1]} : vector<3x4xf32> to vector<3x1xf32>
    %123 = vector.extract_strided_slice %120 {offsets = [0, 2], sizes = [3, 1], strides = [1, 1]} : vector<3x4xf32> to vector<3x1xf32>
    %124 = vector.extract_strided_slice %120 {offsets = [0, 3], sizes = [3, 1], strides = [1, 1]} : vector<3x4xf32> to vector<3x1xf32>
    %125 = vector.broadcast %123 : vector<3x1xf32> to vector<3x256xf32>
    %126 = vector.broadcast %3 : vector<1x256xf32> to vector<3x256xf32>
    %127 = arith.minimumf %125, %126 : vector<3x256xf32>
    %128 = vector.broadcast %121 : vector<3x1xf32> to vector<3x256xf32>
    %129 = vector.broadcast %1 : vector<1x256xf32> to vector<3x256xf32>
    %130 = arith.maximumf %128, %129 : vector<3x256xf32>
    %131 = arith.subf %127, %130 : vector<3x256xf32>
    %cst_37 = arith.constant 0.000000e+00 : f32
    %132 = vector.broadcast %cst_37 : f32 to vector<3x256xf32>
    %133 = arith.maximumf %131, %132 : vector<3x256xf32>
    %134 = vector.broadcast %124 : vector<3x1xf32> to vector<3x256xf32>
    %135 = vector.broadcast %4 : vector<1x256xf32> to vector<3x256xf32>
    %136 = arith.minimumf %134, %135 : vector<3x256xf32>
    %137 = vector.broadcast %122 : vector<3x1xf32> to vector<3x256xf32>
    %138 = vector.broadcast %2 : vector<1x256xf32> to vector<3x256xf32>
    %139 = arith.maximumf %137, %138 : vector<3x256xf32>
    %140 = arith.subf %136, %139 : vector<3x256xf32>
    %cst_38 = arith.constant 0.000000e+00 : f32
    %141 = vector.broadcast %cst_38 : f32 to vector<3x256xf32>
    %142 = arith.maximumf %140, %141 : vector<3x256xf32>
    %143 = arith.mulf %133, %142 : vector<3x256xf32>
    %144 = arith.subf %123, %121 : vector<3x1xf32>
    %145 = arith.subf %124, %122 : vector<3x1xf32>
    %146 = arith.mulf %144, %145 : vector<3x1xf32>
    %147 = vector.broadcast %146 : vector<3x1xf32> to vector<3x256xf32>
    %148 = vector.broadcast %7 : vector<1x256xf32> to vector<3x256xf32>
    %149 = arith.addf %147, %148 : vector<3x256xf32>
    %150 = arith.subf %149, %143 : vector<3x256xf32>
    %151 = arith.divf %143, %150 : vector<3x256xf32>
    %cst_39 = arith.constant dense<0xFF800000> : vector<256xf32>
    %152 = vector.multi_reduction <maximumf>, %151, %cst_39 [0] : vector<3x256xf32> to vector<256xf32>
    %153 = vector.shape_cast %152 : vector<256xf32> to vector<1x256xf32>
    %154 = vector.broadcast %153 : vector<1x256xf32> to vector<3x256xf32>
    %155 = arith.cmpf oeq, %151, %154 : vector<3x256xf32>
    %c3_i32_40 = arith.constant 3 : i32
    %156 = vector.broadcast %c3_i32_40 : i32 to vector<3x256xi32>
    %157 = arith.select %155, %12, %156 : vector<3x256xi1>, vector<3x256xi32>
    %cst_41 = arith.constant dense<2147483647> : vector<256xi32>
    %158 = vector.multi_reduction <minsi>, %157, %cst_41 [0] : vector<3x256xi32> to vector<256xi32>
    %159 = vector.shape_cast %158 : vector<256xi32> to vector<1x256xi32>
    %cst_42 = arith.constant dense<0xFF800000> : vector<3xf32>
    %160 = vector.multi_reduction <maximumf>, %151, %cst_42 [1] : vector<3x256xf32> to vector<3xf32>
    %161 = vector.shape_cast %160 : vector<3xf32> to vector<3x1xf32>
    %162 = vector.broadcast %161 : vector<3x1xf32> to vector<3x256xf32>
    %163 = arith.cmpf oeq, %151, %162 : vector<3x256xf32>
    %c256_i32_43 = arith.constant 256 : i32
    %164 = vector.broadcast %c256_i32_43 : i32 to vector<3x256xi32>
    %165 = arith.select %163, %13, %164 : vector<3x256xi1>, vector<3x256xi32>
    %cst_44 = arith.constant dense<2147483647> : vector<3xi32>
    %166 = vector.multi_reduction <minsi>, %165, %cst_44 [1] : vector<3x256xi32> to vector<3xi32>
    %167 = vector.shape_cast %166 : vector<3xi32> to vector<3x1xi32>
    %168 = vector.broadcast %167 : vector<3x1xi32> to vector<3x256xi32>
    %169 = arith.cmpi eq, %13, %168 : vector<3x256xi32>
    %c-1_i32_45 = arith.constant -1 : i32
    %170 = vector.broadcast %c-1_i32_45 : i32 to vector<3x256xi32>
    %171 = arith.select %169, %12, %170 : vector<3x256xi1>, vector<3x256xi32>
    %cst_46 = arith.constant dense<-2147483648> : vector<256xi32>
    %172 = vector.multi_reduction <maxsi>, %171, %cst_46 [0] : vector<3x256xi32> to vector<256xi32>
    %173 = vector.shape_cast %172 : vector<256xi32> to vector<1x256xi32>
    %c0_i32_47 = arith.constant 0 : i32
    %174 = vector.broadcast %c0_i32_47 : i32 to vector<1x256xi32>
    %175 = arith.cmpi sge, %173, %174 : vector<1x256xi32>
    %176 = arith.select %175, %173, %159 : vector<1x256xi1>, vector<1x256xi32>
    %cst_48 = arith.constant 1.000000e+00 : f32
    %177 = vector.broadcast %cst_48 : f32 to vector<1x256xf32>
    %178 = arith.select %175, %177, %153 : vector<1x256xi1>, vector<1x256xf32>
    %179 = vector.broadcast %176 : vector<1x256xi32> to vector<8x256xi32>
    %180 = arith.cmpi eq, %14, %179 : vector<8x256xi32>
    %181 = arith.extui %180 : vector<8x256xi1> to vector<8x256xi32>
    %182 = arith.sitofp %181 : vector<8x256xi32> to vector<8x256xf32>
    %c1_49 = arith.constant 1 : index
    %c0_50 = arith.constant 0 : index
    %c0_51 = arith.constant 0 : index
    %183 = vector.load %arg2[%c1_49, %c0_50, %c0_51] : memref<2x8x8xf32, #tpu.memory_space<vmem>>, vector<1x8x8xf32>
    %184 = vector.shape_cast %183 : vector<1x8x8xf32> to vector<8x8xf32>
    %cst_52 = arith.constant dense<0.000000e+00> : vector<8x256xf32>
    %185 = tpu.matmul %184, %182, %cst_52 {dimension_numbers = #tpu.dot_dimension_numbers<[1], [0], [0], [1], [0, 0, 1, 1], [], []>, precision = #tpu.contract_precision<fp32>} : vector<8x8xf32>, vector<8x256xf32>, vector<8x256xf32> -> vector<8x256xf32>
    %cst_53 = arith.constant 5.000000e-01 : f32
    %186 = vector.broadcast %cst_53 : f32 to vector<1x256xf32>
    %187 = arith.cmpf olt, %178, %186 : vector<1x256xf32>
    %188 = vector.extract_strided_slice %185 {offsets = [4, 0], sizes = [1, 256], strides = [1, 1]} : vector<8x256xf32> to vector<1x256xf32>
    %cst_54 = arith.constant 0.000000e+00 : f32
    %189 = vector.broadcast %cst_54 : f32 to vector<1x256xf32>
    %190 = arith.select %187, %189, %188 : vector<1x256xi1>, vector<1x256xf32>
    %191 = vector.extract_strided_slice %185 {offsets = [0, 0], sizes = [4, 256], strides = [1, 1]} : vector<8x256xf32> to vector<4x256xf32>
    %192 = arith.mulf %191, %9 : vector<4x256xf32>
    %193 = arith.addf %192, %11 : vector<4x256xf32>
    %c1_55 = arith.constant 1 : index
    %c0_56 = arith.constant 0 : index
    %c0_57 = arith.constant 0 : index
    %194 = vector.load %arg5[%c1_55, %c0_56, %c0_57] : memref<2x4x256xf32, #tpu.memory_space<vmem>>, vector<1x4x256xf32>
    %195 = vector.shape_cast %194 : vector<1x4x256xf32> to vector<4x256xf32>
    %196 = arith.subf %195, %193 : vector<4x256xf32>
    %197 = math.absf %196 : vector<4x256xf32>
    %cst_58 = arith.constant dense<0.000000e+00> : vector<256xf32>
    %198 = vector.multi_reduction <add>, %197, %cst_58 [0] : vector<4x256xf32> to vector<256xf32>
    %199 = vector.shape_cast %198 : vector<256xf32> to vector<1x256xf32>
    %c1_59 = arith.constant 1 : index
    %c0_60 = arith.constant 0 : index
    %c0_61 = arith.constant 0 : index
    %200 = vector.load %arg6[%c1_59, %c0_60, %c0_61] : memref<2x8x256xf32, #tpu.memory_space<vmem>>, vector<1x8x256xf32>
    %201 = vector.shape_cast %200 : vector<1x8x256xf32> to vector<8x256xf32>
    %cst_62 = arith.constant dense<0xFF800000> : vector<256xf32>
    %202 = vector.multi_reduction <maximumf>, %201, %cst_62 [0] : vector<8x256xf32> to vector<256xf32>
    %203 = vector.shape_cast %202 : vector<256xf32> to vector<1x256xf32>
    %204 = vector.broadcast %203 : vector<1x256xf32> to vector<8x256xf32>
    %205 = arith.subf %201, %204 : vector<8x256xf32>
    %206 = math.exp %205 : vector<8x256xf32>
    %cst_63 = arith.constant dense<0.000000e+00> : vector<256xf32>
    %207 = vector.multi_reduction <add>, %206, %cst_63 [0] : vector<8x256xf32> to vector<256xf32>
    %208 = vector.shape_cast %207 : vector<256xf32> to vector<1x256xf32>
    %209 = math.log %208 : vector<1x256xf32>
    %210 = arith.addf %203, %209 : vector<1x256xf32>
    %211 = vector.broadcast %190 : vector<1x256xf32> to vector<8x256xf32>
    %212 = arith.subf %16, %211 : vector<8x256xf32>
    %213 = math.absf %212 : vector<8x256xf32>
    %cst_64 = arith.constant 5.000000e-01 : f32
    %214 = vector.broadcast %cst_64 : f32 to vector<8x256xf32>
    %215 = arith.cmpf olt, %213, %214 : vector<8x256xf32>
    %cst_65 = arith.constant 0.000000e+00 : f32
    %216 = vector.broadcast %cst_65 : f32 to vector<8x256xf32>
    %217 = arith.select %215, %201, %216 : vector<8x256xi1>, vector<8x256xf32>
    %cst_66 = arith.constant dense<0.000000e+00> : vector<256xf32>
    %218 = vector.multi_reduction <add>, %217, %cst_66 [0] : vector<8x256xf32> to vector<256xf32>
    %219 = vector.shape_cast %218 : vector<256xf32> to vector<1x256xf32>
    %220 = arith.subf %210, %219 : vector<1x256xf32>
    %221 = tpu.concatenate %88, %190 in 0 : vector<1x256xf32>, vector<1x256xf32> -> vector<2x256xf32>
    %222 = tpu.concatenate %97, %199 in 0 : vector<1x256xf32>, vector<1x256xf32> -> vector<2x256xf32>
    %223 = tpu.concatenate %118, %220 in 0 : vector<1x256xf32>, vector<1x256xf32> -> vector<2x256xf32>
    %cst_67 = arith.constant 5.000000e-01 : f32
    %224 = vector.broadcast %cst_67 : f32 to vector<2x256xf32>
    %225 = arith.cmpf ogt, %221, %224 : vector<2x256xf32>
    %226 = arith.extui %225 : vector<2x256xi1> to vector<2x256xi32>
    %227 = arith.sitofp %226 : vector<2x256xi32> to vector<2x256xf32>
    %228 = arith.mulf %222, %227 : vector<2x256xf32>
    %229 = arith.mulf %223, %227 : vector<2x256xf32>
    %230 = tpu.concatenate %227, %228, %229 in 0 : vector<2x256xf32>, vector<2x256xf32>, vector<2x256xf32> -> vector<6x256xf32>
    %cst_68 = arith.constant dense<0.000000e+00> : vector<6xf32>
    %231 = vector.multi_reduction <add>, %230, %cst_68 [1] : vector<6x256xf32> to vector<6xf32>
    %232 = vector.shape_cast %231 : vector<6xf32> to vector<6x1xf32>
    %233 = vector.extract_strided_slice %232 {offsets = [0, 0], sizes = [2, 1], strides = [1, 1]} : vector<6x1xf32> to vector<2x1xf32>
    %234 = vector.extract_strided_slice %232 {offsets = [2, 0], sizes = [2, 1], strides = [1, 1]} : vector<6x1xf32> to vector<2x1xf32>
    %235 = vector.extract_strided_slice %232 {offsets = [4, 0], sizes = [2, 1], strides = [1, 1]} : vector<6x1xf32> to vector<2x1xf32>
    %cst_69 = arith.constant 0.000000e+00 : f32
    %236 = vector.broadcast %cst_69 : f32 to vector<2x256xf32>
    %237 = arith.select %225, %236, %223 : vector<2x256xi1>, vector<2x256xf32>
    %cst_70 = arith.constant 3.000000e+00 : f32
    %238 = vector.broadcast %cst_70 : f32 to vector<2x1xf32>
    %239 = arith.mulf %238, %233 : vector<2x1xf32>
    %cst_71 = arith.constant 2.560000e+02 : f32
    %240 = vector.broadcast %cst_71 : f32 to vector<2x1xf32>
    %241 = arith.minimumf %239, %240 : vector<2x1xf32>
    %242 = tpu.bitcast %237 : vector<2x256xf32> -> vector<2x256xi32>
    %c0_i32_72 = arith.constant 0 : i32
    %243 = vector.broadcast %c0_i32_72 : i32 to vector<2x1xi32>
    %c1073741824_i32 = arith.constant 1073741824 : i32
    %244 = vector.broadcast %c1073741824_i32 : i32 to vector<2x1xi32>
    %c0_i32_73 = arith.constant 0 : i32
    %c31_i32 = arith.constant 31 : i32
    %245 = arith.addi %c0_i32_73, %c31_i32 : i32
    %c1_i32 = arith.constant 1 : i32
    %246:2 = scf.for %arg8 = %c0_i32_73 to %245 step %c1_i32 iter_args(%arg9 = %243, %arg10 = %244) -> (vector<2x1xi32>, vector<2x1xi32>)  : i32 {
      %302 = arith.ori %arg9, %arg10 : vector<2x1xi32>
      %303 = vector.broadcast %302 : vector<2x1xi32> to vector<2x256xi32>
      %304 = arith.cmpi sge, %242, %303 : vector<2x256xi32>
      %305 = arith.extui %304 : vector<2x256xi1> to vector<2x256xi32>
      %306 = arith.sitofp %305 : vector<2x256xi32> to vector<2x256xf32>
      %cst_90 = arith.constant dense<0.000000e+00> : vector<2xf32>
      %307 = vector.multi_reduction <add>, %306, %cst_90 [1] : vector<2x256xf32> to vector<2xf32>
      %308 = vector.shape_cast %307 : vector<2xf32> to vector<2x1xf32>
      %309 = arith.cmpf oge, %308, %241 : vector<2x1xf32>
      %310 = arith.select %309, %302, %arg9 : vector<2x1xi1>, vector<2x1xi32>
      %c1_i32_91 = arith.constant 1 : i32
      %311 = vector.broadcast %c1_i32_91 : i32 to vector<2x1xi32>
      %312 = arith.shrsi %arg10, %311 : vector<2x1xi32>
      scf.yield %310, %312 : vector<2x1xi32>, vector<2x1xi32>
    }
    %247 = vector.broadcast %246#0 : vector<2x1xi32> to vector<2x256xi32>
    %248 = arith.cmpi sgt, %242, %247 : vector<2x256xi32>
    %249 = vector.broadcast %246#0 : vector<2x1xi32> to vector<2x256xi32>
    %250 = arith.cmpi eq, %242, %249 : vector<2x256xi32>
    %cst_74 = arith.constant 0.000000e+00 : f32
    %251 = vector.broadcast %cst_74 : f32 to vector<2x256xf32>
    %252 = arith.select %250, %237, %251 : vector<2x256xi1>, vector<2x256xf32>
    %cst_75 = arith.constant dense<0xFF800000> : vector<2xf32>
    %253 = vector.multi_reduction <maximumf>, %252, %cst_75 [1] : vector<2x256xf32> to vector<2xf32>
    %254 = vector.shape_cast %253 : vector<2xf32> to vector<2x1xf32>
    %255 = arith.extui %248 : vector<2x256xi1> to vector<2x256xi32>
    %256 = arith.sitofp %255 : vector<2x256xi32> to vector<2x256xf32>
    %cst_76 = arith.constant 0.000000e+00 : f32
    %257 = vector.broadcast %cst_76 : f32 to vector<2x256xf32>
    %258 = arith.select %248, %237, %257 : vector<2x256xi1>, vector<2x256xf32>
    %259 = tpu.concatenate %256, %258 in 0 : vector<2x256xf32>, vector<2x256xf32> -> vector<4x256xf32>
    %cst_77 = arith.constant dense<0.000000e+00> : vector<4xf32>
    %260 = vector.multi_reduction <add>, %259, %cst_77 [1] : vector<4x256xf32> to vector<4xf32>
    %261 = vector.shape_cast %260 : vector<4xf32> to vector<4x1xf32>
    %262 = vector.extract_strided_slice %261 {offsets = [0, 0], sizes = [2, 1], strides = [1, 1]} : vector<4x1xf32> to vector<2x1xf32>
    %263 = vector.extract_strided_slice %261 {offsets = [2, 0], sizes = [2, 1], strides = [1, 1]} : vector<4x1xf32> to vector<2x1xf32>
    %cst_78 = arith.constant 5.000000e-01 : f32
    %264 = vector.broadcast %cst_78 : f32 to vector<2x1xf32>
    %265 = arith.cmpf ogt, %241, %264 : vector<2x1xf32>
    %266 = arith.subf %241, %262 : vector<2x1xf32>
    %267 = arith.mulf %266, %254 : vector<2x1xf32>
    %268 = arith.addf %263, %267 : vector<2x1xf32>
    %cst_79 = arith.constant 0.000000e+00 : f32
    %269 = vector.broadcast %cst_79 : f32 to vector<2x1xf32>
    %270 = arith.select %265, %268, %269 : vector<2x1xi1>, vector<2x1xf32>
    %271 = tpu.iota {dimensions = array<i32: 1>} : vector<2x128xi32>
    %c0_i32_80 = arith.constant 0 : i32
    %272 = vector.broadcast %c0_i32_80 : i32 to vector<2x128xi32>
    %273 = arith.cmpi eq, %271, %272 : vector<2x128xi32>
    %cst_81 = arith.constant 0.000000e+00 : f32
    %274 = vector.shape_cast %235 : vector<2x1xf32> to vector<2x1xf32>
    %275 = vector.broadcast %274 : vector<2x1xf32> to vector<2x128xf32>
    %276 = vector.broadcast %cst_81 : f32 to vector<2x128xf32>
    %277 = arith.select %273, %275, %276 : vector<2x128xi1>, vector<2x128xf32>
    %c1_i32_82 = arith.constant 1 : i32
    %278 = vector.broadcast %c1_i32_82 : i32 to vector<2x128xi32>
    %279 = arith.cmpi eq, %271, %278 : vector<2x128xi32>
    %cst_83 = arith.constant 0.000000e+00 : f32
    %280 = vector.shape_cast %270 : vector<2x1xf32> to vector<2x1xf32>
    %281 = vector.broadcast %280 : vector<2x1xf32> to vector<2x128xf32>
    %282 = vector.broadcast %cst_83 : f32 to vector<2x128xf32>
    %283 = arith.select %279, %281, %282 : vector<2x128xi1>, vector<2x128xf32>
    %284 = arith.addf %277, %283 : vector<2x128xf32>
    %c2_i32 = arith.constant 2 : i32
    %285 = vector.broadcast %c2_i32 : i32 to vector<2x128xi32>
    %286 = arith.cmpi eq, %271, %285 : vector<2x128xi32>
    %cst_84 = arith.constant 0.000000e+00 : f32
    %287 = vector.shape_cast %234 : vector<2x1xf32> to vector<2x1xf32>
    %288 = vector.broadcast %287 : vector<2x1xf32> to vector<2x128xf32>
    %289 = vector.broadcast %cst_84 : f32 to vector<2x128xf32>
    %290 = arith.select %286, %288, %289 : vector<2x128xi1>, vector<2x128xf32>
    %291 = arith.addf %284, %290 : vector<2x128xf32>
    %c3_i32_85 = arith.constant 3 : i32
    %292 = vector.broadcast %c3_i32_85 : i32 to vector<2x128xi32>
    %293 = arith.cmpi eq, %271, %292 : vector<2x128xi32>
    %cst_86 = arith.constant 0.000000e+00 : f32
    %294 = vector.shape_cast %233 : vector<2x1xf32> to vector<2x1xf32>
    %295 = vector.broadcast %294 : vector<2x1xf32> to vector<2x128xf32>
    %296 = vector.broadcast %cst_86 : f32 to vector<2x128xf32>
    %297 = arith.select %293, %295, %296 : vector<2x128xi1>, vector<2x128xf32>
    %298 = arith.addf %291, %297 : vector<2x128xf32>
    %c0_87 = arith.constant 0 : index
    %c0_88 = arith.constant 0 : index
    %c0_89 = arith.constant 0 : index
    %299 = vector.load %arg7[%c0_87, %c0_88, %c0_89] : memref<1x2x128xf32, #tpu.memory_space<vmem>>, vector<1x2x128xf32>
    %300 = vector.shape_cast %299 : vector<1x2x128xf32> to vector<2x128xf32>
    %301 = vector.shape_cast %298 : vector<2x128xf32> to vector<1x2x128xf32>
    tpu.vector_store %arg7[%c0_87, %c0_88, %c0_89], %301 {strides = array<i32>} : memref<1x2x128xf32, #tpu.memory_space<vmem>>, vector<1x2x128xf32>,
    return
  }
  func.func @transform_0(%arg0: i32) -> (i32, i32, i32) {
    %c0_i32 = arith.constant 0 : i32
    %c0_i32_0 = arith.constant 0 : i32
    %c0_i32_1 = arith.constant 0 : i32
    return %arg0, %c0_i32, %c0_i32_0 : i32, i32, i32
  }
  func.func @transform_1(%arg0: i32) -> (i32, i32, i32) {
    %c0_i32 = arith.constant 0 : i32
    %c0_i32_0 = arith.constant 0 : i32
    %c0_i32_1 = arith.constant 0 : i32
    return %arg0, %c0_i32, %c0_i32_0 : i32, i32, i32
  }
  func.func @transform_2(%arg0: i32) -> (i32, i32) {
    %c0_i32 = arith.constant 0 : i32
    %c0_i32_0 = arith.constant 0 : i32
    %c0_i32_1 = arith.constant 0 : i32
    return %c0_i32, %c0_i32_0 : i32, i32
  }
  func.func @transform_3(%arg0: i32) -> (i32, i32, i32) {
    %c0_i32 = arith.constant 0 : i32
    %c0_i32_0 = arith.constant 0 : i32
    %c0_i32_1 = arith.constant 0 : i32
    %c0_i32_2 = arith.constant 0 : i32
    return %c0_i32, %c0_i32_0, %c0_i32_1 : i32, i32, i32
  }
  func.func @transform_4(%arg0: i32) -> (i32, i32, i32) {
    %c0_i32 = arith.constant 0 : i32
    %c0_i32_0 = arith.constant 0 : i32
    %c0_i32_1 = arith.constant 0 : i32
    return %arg0, %c0_i32, %c0_i32_0 : i32, i32, i32
  }
  func.func @transform_5(%arg0: i32) -> (i32, i32, i32) {
    %c0_i32 = arith.constant 0 : i32
    %c0_i32_0 = arith.constant 0 : i32
    %c0_i32_1 = arith.constant 0 : i32
    return %arg0, %c0_i32, %c0_i32_0 : i32, i32, i32
  }
  func.func @transform_6(%arg0: i32) -> (i32, i32, i32) {
    %c0_i32 = arith.constant 0 : i32
    %c0_i32_0 = arith.constant 0 : i32
    %c0_i32_1 = arith.constant 0 : i32
    return %arg0, %c0_i32, %c0_i32_0 : i32, i32, i32
  }
}

</mosaic_0001>

<bundles_post_ra>
// kernel: tpu_custom_call.1
= control target key start
LH: loop header
LB: loop body
LE: loop exit
PB: predicated region body
PF: predicated region fallthrough
CT: control target
= control target key end

     0   :  { %11 = vsyncpa [#allocation3], 0  ;;  %s2625_s0 = inlined_call_operand.vmem [shape: f32[2,3,4], index: 0, kind: input, shape index: {}]   ;;  %s2626_s1 = inlined_call_operand.hbm [shape: f32[2,8,8], index: 1, kind: input, shape index: {}]   ;;  %s2627_s2 = inlined_call_operand.hbm [shape: f32[4,256], index: 2, kind: input, shape index: {}]   ;;  %s2628_s3 = inlined_call_operand.hbm [shape: f32[2,4,256], index: 3, kind: input, shape index: {}]   ;;  %s2629_s4 = inlined_call_operand.hbm [shape: f32[2,4,256], index: 4, kind: input, shape index: {}]   ;;  %s2630_s5 = inlined_call_operand.vmem [shape: f32[2,8,256], index: 5, kind: input, shape index: {}]   ;;  %s2631_s6 = inlined_call_operand.hbm [shape: f32[1,2,128], index: 6, kind: output, shape index: {}]  }
   0x1   :  { %12 = vsyncpa [#allocation6], 0 }
   0x2   :  { %13 = vsyncpa [#allocation9], 0 }
   0x3   :  { %14 = vsyncpa [#allocation4], 0  ;;  %s2094_s21 = smov [#allocation5]   ;;  %s2095_s23 = smov [#allocation2]  }
   0x4   :  { %s35_s22 = sshll.u32 %s2094_s21, 4  ;;  %s22_s24 = sshll.u32 %s2095_s23, 4  ;;  %s36_s22 = int_to_ptr.vmem [resolvable:$true] %s35_s22  ;;  %s2145_s24 = int_to_ptr.vmem [resolvable:$true] %s22_s24 }
   0x5   :  { %s1952_s27 = scalar_lea.hbm %s2627_s2, 128 }
   0x6   :  { %p1953_p0 = scmp.ne.s32.totalorder %s2627_s2, %s1952_s27  ;;  %p1956_p1 = scmp.lt.u32.totalorder %s1952_s27, %s2627_s2 }
   0x8   :  { %p1958_p2 = pnand %p1956_p1, %p1953_p0 }
   0xa   :  { %1961 = shalt.err (!%p1958_p2)
}
   0xb   :  { %s1962_s8 = scalar_lea.vmem %s36_s22, 128  ;;  %p1967_p4 = scmp.lt.s32.totalorder %s36_s22, %s36_s22 }
   0xc   :  { %p1963_p3 = scmp.ne.s32.totalorder %s36_s22, %s1962_s8  ;;  %p1968_p5 = scmp.lt.s32.totalorder %s1962_s8, %s1962_s8 }
   0xe   :  { %p1969_p6 = por %p1968_p5, %p1967_p4 }
  0x10   :  { %p1970_p7 = pnand %p1969_p6, %p1963_p3 }
  0x12   :  { %1973 = shalt.err (!%p1970_p7)
}
  0x13   :  { %38 = dma.hbm_to_vmem [thread:$0]  %s2627_s2, 128, %s36_s22, [#allocation6]  }
  0x14   :  { %s1974_s13 = scalar_lea.hbm %s2626_s1, 256 }
  0x15   :  { %p1975_p8 = scmp.ne.s32.totalorder %s2626_s1, %s1974_s13  ;;  %p1978_p9 = scmp.lt.u32.totalorder %s1974_s13, %s2626_s1 }
  0x17   :  { %p1980_p10 = pnand %p1978_p9, %p1975_p8 }
  0x19   :  { %1983 = shalt.err (!%p1980_p10)
}
  0x1a   :  { %s1984_s18 = scalar_lea.vmem %s2145_s24, 256  ;;  %p1989_p12 = scmp.lt.s32.totalorder %s2145_s24, %s2145_s24 }
  0x1b   :  { %p1985_p11 = scmp.ne.s32.totalorder %s2145_s24, %s1984_s18  ;;  %p1990_p13 = scmp.lt.s32.totalorder %s1984_s18, %s1984_s18 }
  0x1d   :  { %p1991_p0 = por %p1990_p13, %p1989_p12 }
  0x1f   :  { %p1992_p1 = pnand %p1991_p0, %p1985_p11 }
  0x21   :  { %1995 = shalt.err (!%p1992_p1)
}
  0x22   :  { %s2096_s2 = smov 128   ;;  %s2097_s19 = smov 8  }
  0x23   :  { %28 = dma.hbm_to_vmem [thread:$0]  %s2626_s1, 256, %s2145_s24, [#allocation3], %s2096_s2, %s2096_s2, %s2097_s19  }
  0x24   :  { %s2098_s22 = smov [#allocation7]   ;;  %s2099_s25 = smov [#allocation8]  }
  0x25   :  { %s44_s23 = sshll.u32 %s2098_s22, 4  ;;  %s56_s26 = sshll.u32 %s2099_s25, 4  ;;  %s45_s23 = int_to_ptr.vmem [resolvable:$true] %s44_s23  ;;  %s2179_s26 = int_to_ptr.vmem [resolvable:$true] %s56_s26 }
  0x26   :  { %s1996_s29 = scalar_lea.hbm %s2628_s3, 256 }
  0x27   :  { %p1997_p2 = scmp.ne.s32.totalorder %s2628_s3, %s1996_s29  ;;  %p2000_p3 = scmp.lt.u32.totalorder %s1996_s29, %s2628_s3 }
  0x29   :  { %p2002_p4 = pnand %p2000_p3, %p1997_p2 }
  0x2b   :  { %2005 = shalt.err (!%p2002_p4)
}
  0x2c   :  { %s2006_s1 = scalar_lea.vmem %s45_s23, 256  ;;  %p2011_p6 = scmp.lt.s32.totalorder %s45_s23, %s45_s23 }
  0x2d   :  { %p2007_p5 = scmp.ne.s32.totalorder %s45_s23, %s2006_s1  ;;  %p2012_p7 = scmp.lt.s32.totalorder %s2006_s1, %s2006_s1 }
  0x2f   :  { %p2013_p8 = por %p2012_p7, %p2011_p6 }
  0x31   :  { %p2014_p9 = pnand %p2013_p8, %p2007_p5 }
  0x33   :  { %2017 = shalt.err (!%p2014_p9)
}
  0x34   :  { %50 = dma.hbm_to_vmem [thread:$0]  %s2628_s3, 256, %s45_s23, [#allocation6], %s2096_s2, %s2096_s2, %s2097_s19  }
  0x35   :  { %s2018_s13 = scalar_lea.hbm %s2629_s4, 256 }
  0x36   :  { %p2019_p10 = scmp.ne.s32.totalorder %s2629_s4, %s2018_s13  ;;  %p2022_p11 = scmp.lt.u32.totalorder %s2018_s13, %s2629_s4 }
  0x38   :  { %p2024_p12 = pnand %p2022_p11, %p2019_p10 }
  0x3a   :  { %2027 = shalt.err (!%p2024_p12)
}
  0x3b   :  { %s2028_s18 = scalar_lea.vmem %s2179_s26, 256  ;;  %p2033_p0 = scmp.lt.s32.totalorder %s2179_s26, %s2179_s26 }
  0x3c   :  { %p2029_p13 = scmp.ne.s32.totalorder %s2179_s26, %s2028_s18  ;;  %p2034_p1 = scmp.lt.s32.totalorder %s2028_s18, %s2028_s18 }
  0x3e   :  { %p2035_p2 = por %p2034_p1, %p2033_p0 }
  0x40   :  { %p2036_p3 = pnand %p2035_p2, %p2029_p13 }
  0x42   :  { %2039 = shalt.err (!%p2036_p3)
}
  0x43   :  { %62 = dma.hbm_to_vmem [thread:$0]  %s2629_s4, 256, %s2179_s26, [#allocation9], %s2096_s2, %s2096_s2, %s2097_s19  }
  0x44   :  { %2074 = dma.done.wait [#allocation3], 256  }
  0x45   :  { %2075 = vsyncadd [#allocation3], 4294967040 }
  0x46   :  { %2076 = dma.done.wait [#allocation6], 384  }
  0x47   :  { %2077 = vsyncadd [#allocation6], 4294966912 }
  0x48   :  { %2078 = dma.done.wait [#allocation9], 256  }
  0x49   :  { %2079 = vsyncadd [#allocation9], 4294967040  ;;  %v2100_v0 = vmov 0   ;;  %v2101_v1 = vmov 2   ;;  %v96_v2 = vld [vmem:[%s2625_s0] sm:$0x7]  ;;  %v90_v15 = vlaneseq }
  0x4a   :  { %1915 = vset.pattern.permute.xlu1 %v2100_v0  ;;  %1914 = vset.pattern.permute.xlu0 %v2101_v1  ;;  %s2102_s23 = smov 2   ;;  %v1837_v3 = vld [vmem:[%s2625_s0 + $0x4] sm:$0x7]  ;;  %v2103_v4 = vmov 1   ;;  %v2104_v5 = vmov 3   ;;  %s2105_s4 = smov 127  }
  0x4b   :  { %204 = vrot.lane.b32.xlu0 %v96_v2, %s2102_s23  ;;  %v2225_v16 = vshrl.u32 %v90_v15, 7  ;;  %v77_v18 = vld [vmem:[#allocation5] sm:$0xff]  ;;  %vm245_vm0 = vcmask 1042432  }
  0x4c   :  { %v79_v25 = vrot.slane %v77_v18, 6 }
  0x4d   :  { %v2228_v19 = vsub.s32 2, %v2225_v16  ;;  %v108_v20 = vsub.s32 6, %v2225_v16  ;;  %v180_v21 = vsub.s32 1, %v2225_v16  ;;  %v128_v22 = vsub.s32 0, %v2225_v16 }
  0x4e   :  { %v2234_v23 = vsub.s32 4, %v2225_v16  ;;  %v156_v24 = vsub.s32 3, %v2225_v16  ;;  %v160_v26 = vsub.s32 7, %v2225_v16  ;;  %v184_v27 = vsub.s32 5, %v2225_v16 }
  0x4f   :  { %959 = vrot.lane.b32.xlu0 %v1837_v3, %s2102_s23  ;;  %v105_v30 = vrot.slane %v77_v18, %v2228_v19  ;;  %v109_v31 = vrot.slane %v77_v18, %v108_v20  ;;  %v181_v32 = vrot.slane %v77_v18, %v180_v21  ;;  %v129_v33 = vrot.slane %v77_v18, %v128_v22 }
  0x50   :  { %v133_v34 = vrot.slane %v77_v18, %v2234_v23  ;;  %v157_v35 = vrot.slane %v77_v18, %v156_v24  ;;  %v81_v36 = vsub.f32 %v77_v18, %v79_v25  ;;  %v161_v37 = vrot.slane %v77_v18, %v160_v26 }
  0x51   :  { %v185_v38 = vrot.slane %v77_v18, %v184_v27  ;;  %v115_v39 = vrot.slane %v105_v30, %v2228_v19  ;;  %v119_v40 = vrot.slane %v109_v31, %v2228_v19  ;;  %v191_v41 = vrot.slane %v181_v32, %v180_v21 }
  0x52   :  { %v139_v42 = vrot.slane %v129_v33, %v128_v22  ;;  %v143_v43 = vrot.slane %v133_v34, %v128_v22  ;;  %v167_v44 = vrot.slane %v157_v35, %v156_v24  ;;  %v1828_v47 = vrot.slane %v81_v36, 9 }
  0x53   :  { %99 = vperm.xlu0 %1914, %v96_v2   ;;  %v171_v48 = vrot.slane %v161_v37, %v156_v24  ;;  %v195_v49 = vrot.slane %v185_v38, %v180_v21 }
  0x54   :  { %v86_v57 = vmul.f32 %v1828_v47, %v81_v36 }
  0x57   :  { %1917 = vset.pattern.permute.xlu0 %v2103_v4 }
  0x58   :  { %175 = vperm.xlu0 %1917, %v96_v2  }
  0x5c   :  { %1920 = vset.pattern.permute.xlu0 %v2104_v5 }
  0x5d   :  { %942 = vperm.xlu0 %1920, %v1837_v3  }
  0x61   :  { %1923 = vset.pattern.permute.xlu0 %v2101_v1 }
  0xbd   :  { %v205_v6 = vpop.permute.xlu0 %204 }
  0xbe   :  { %v207_v7 = vsub.f32 %v96_v2, %v205_v6 }
  0xc0   :  { %209 = vrot.lane.b32.xlu1 %v207_v7, %s2105_s4 }
  0xc1   :  { %v960_v8 = vpop.permute.xlu0 %959 }
  0xc2   :  { %v962_v9 = vsub.f32 %v1837_v3, %v960_v8 }
  0xc4   :  { %964 = vrot.lane.b32.xlu1 %v962_v9, %s2105_s4 }
  0xc8   :  { %123 = vperm.xlu1 %1915, %v96_v2  }
  0xcc   :  { %1916 = vset.pattern.permute.xlu1 %v2104_v5 }
  0xcd   :  { %151 = vperm.xlu1 %1916, %v96_v2  }
  0xd1   :  { %1918 = vset.pattern.permute.xlu1 %v2101_v1 }
  0xd2   :  { %926 = vperm.xlu1 %1918, %v1837_v3   ;;  %v100_v28 = vpop.permute.xlu0 %99 }
  0xd3   :  { %v120_v50 = vmin.f32 %v100_v28, %v115_v39  ;;  %v121_v51 = vmin.f32 %v100_v28, %v119_v40 }
  0xd6   :  { %1919 = vset.pattern.permute.xlu1 %v2100_v0 }
  0xd7   :  { %932 = vperm.xlu1 %1919, %v1837_v3   ;;  %v176_v45 = vpop.permute.xlu0 %175 }
  0xd8   :  { %v196_v52 = vmax.f32 %v176_v45, %v191_v41  ;;  %v197_v59 = vmax.f32 %v176_v45, %v195_v49 }
  0xdb   :  { %1921 = vset.pattern.permute.xlu1 %v2103_v4 }
  0xdc   :  { %948 = vperm.xlu1 %1921, %v1837_v3   ;;  %v943_v56 = vpop.permute.xlu0 %942  ;;  %v222_v3 = vrot.slane %v86_v57, %v2228_v19 }
  0xdd   :  { %v945_v61 = vmin.f32 %v943_v56, %v167_v44  ;;  %v946_v62 = vmin.f32 %v943_v56, %v171_v48 }
  0xde   :  { %v232_v25 = vrot.slane %v222_v3, %v2228_v19 }
  0xe0   :  { %1922 = vset.pattern.permute.xlu1 %v2101_v1 }
 0x132   :  { %v210_v10 = vpop.permute.xlu1 %209 }
 0x133   :  { %v212_v11 = vmul.f32 %v210_v10, %v207_v7 }
 0x135   :  { %215 = vperm.xlu1 %1922, %v212_v11   ;;  %v226_v11 = vrot.slane %v86_v57, %v108_v20  ;;  %v2263_v57 = vand.u32 127, %v90_v15 }
 0x136   :  { %v965_v12 = vpop.permute.xlu1 %964 }
 0x137   :  { %v967_v13 = vmul.f32 %v965_v12, %v962_v9  ;;  %v236_v26 = vrot.slane %v226_v11, %v2228_v19 }
 0x139   :  { %970 = vperm.xlu0 %1923, %v967_v13  }
 0x147   :  { %v124_v14 = vpop.permute.xlu1 %123 }
 0x148   :  { %v144_v53 = vmax.f32 %v124_v14, %v139_v42  ;;  %v145_v54 = vmax.f32 %v124_v14, %v143_v43 }
 0x14a   :  { %v146_v63 = vsub.f32 %v120_v50, %v144_v53  ;;  %v147_v1 = vsub.f32 %v121_v51, %v145_v54 }
 0x14c   :  { %v152_v17 = vpop.permute.xlu1 %151  ;;  %v148_v12 = vmax.f32 %v146_v63, 0.0  ;;  %v149_v13 = vmax.f32 %v147_v1, 0.0 }
 0x14d   :  { %v172_v55 = vmin.f32 %v152_v17, %v167_v44  ;;  %v173_v58 = vmin.f32 %v152_v17, %v171_v48 }
 0x14f   :  { %v198_v2 = vsub.f32 %v172_v55, %v196_v52  ;;  %v199_v4 = vsub.f32 %v173_v58, %v197_v59  ;;  %v2266_v58 = vadd.s32 128, %v2263_v57 }
 0x151   :  { %v927_v29 = vpop.permute.xlu1 %926  ;;  %v200_v14 = vmax.f32 %v198_v2, 0.0  ;;  %v201_v17 = vmax.f32 %v199_v4, 0.0 }
 0x152   :  { %v929_v5 = vmin.f32 %v927_v29, %v115_v39  ;;  %v930_v8 = vmin.f32 %v927_v29, %v119_v40 }
 0x153   :  { %v202_v31 = vmul.f32 %v200_v14, %v148_v12  ;;  %v203_v29 = vmul.f32 %v201_v17, %v149_v13 }
 0x156   :  { %v933_v46 = vpop.permute.xlu1 %932 }
 0x157   :  { %v935_v6 = vmax.f32 %v933_v46, %v139_v42  ;;  %v936_v9 = vmax.f32 %v933_v46, %v143_v43 }
 0x159   :  { %v937_v18 = vsub.f32 %v929_v5, %v935_v6  ;;  %v938_v22 = vsub.f32 %v930_v8, %v936_v9 }
 0x15b   :  { %v949_v60 = vpop.permute.xlu1 %948  ;;  %v939_v27 = vmax.f32 %v937_v18, 0.0  ;;  %v940_v32 = vmax.f32 %v938_v22, 0.0 }
 0x15c   :  { %v951_v7 = vmax.f32 %v949_v60, %v191_v41  ;;  %v952_v10 = vmax.f32 %v949_v60, %v195_v49 }
 0x15e   :  { %v953_v21 = vsub.f32 %v945_v61, %v951_v7  ;;  %v954_v24 = vsub.f32 %v946_v62, %v952_v10 }
 0x160   :  { %v955_v28 = vmax.f32 %v953_v21, 0.0  ;;  %v956_v33 = vmax.f32 %v954_v24, 0.0  ;;  %v2106_v24 = vmov 0.0  }
 0x161   :  { %416 = vmatprep.mubr.f32.mxu0 %v2106_v24  ;;  %1151 = vmatprep.mubr.f32.mxu1 %v2106_v24 }
 0x162   :  { %v957_v38 = vmul.f32 %v955_v28, %v939_v27  ;;  %v958_v39 = vmul.f32 %v956_v33, %v940_v32 }
 0x1b4   :  { %v216_v30 = vpop.permute.xlu1 %215 }
 0x1b5   :  { %v237_v20 = vadd.f32 %v232_v25, %v216_v30  ;;  %v238_v34 = vadd.f32 %v236_v26, %v216_v30 }
 0x1b7   :  { %v239_v35 = vsub.f32 %v237_v20, %v202_v31  ;;  %v240_v36 = vsub.f32 %v238_v34, %v203_v29 }
 0x1b8   :  { %v971_v37 = vpop.permute.xlu0 %970 }
 0x1b9   :  { %1926 = vrcp.f32 %v239_v35  ;;  %v973_v40 = vadd.f32 %v971_v37, %v232_v25  ;;  %v974_v41 = vadd.f32 %v971_v37, %v236_v26 }
 0x1ba   :  { %1928 = vrcp.f32 %v240_v36 }
 0x1bb   :  { %v975_v42 = vsub.f32 %v973_v40, %v957_v38  ;;  %v976_v19 = vsub.f32 %v974_v41, %v958_v39 }
 0x1bd   :  { %1930 = vrcp.f32 %v975_v42 }
 0x1be   :  { %1932 = vrcp.f32 %v976_v19 }
 0x1c3   :  { %v1927_v43 = vpop.eup %1926 }
 0x1c4   :  { %v1929_v44 = vpop.eup %1928  ;;  %v2246_v45 = vmul.f32 %v1927_v43, %v202_v31 }
 0x1c5   :  { %v2248_v46 = vmul.f32 %v1929_v44, %v203_v29 }
 0x1c6   :  { %v246_v47 = vsel %vm245_vm0, %v2246_v45, -inf }
 0x1c7   :  { %v1931_v48 = vpop.eup %1930  ;;  %v253_v49 = vsel %vm245_vm0, %v2248_v46, -inf  ;;  %v247_v25 = vrot.slane %v246_v47, 4 }
 0x1c8   :  { %v1933_v50 = vpop.eup %1932  ;;  %v2254_v51 = vmul.f32 %v1931_v48, %v957_v38  ;;  %v284_v52 = vmax.f32 %v246_v47, %v253_v49  ;;  %v254_v26 = vrot.slane %v253_v49, 4 }
 0x1c9   :  { %v2256_v53 = vmul.f32 %v1933_v50, %v958_v39  ;;  %v248_v27 = vmax.f32 %v246_v47, %v247_v25 }
 0x1ca   :  { %285 = vmax.xlane.f32.xlu1 %v284_v52  ;;  %v981_v54 = vsel %vm245_vm0, %v2254_v51, -inf  ;;  %v255_v28 = vmax.f32 %v253_v49, %v254_v26  ;;  %v1081_v26 = vld [vmem:[#allocation2 + $0x8] sm:$0xff] }
 0x1cb   :  { %v988_v55 = vsel %vm245_vm0, %v2256_v53, -inf  ;;  %v982_v30 = vrot.slane %v981_v54, 4  ;;  %v249_v31 = vrot.slane %v248_v27, 2 }
 0x1cc   :  { %v1019_v56 = vmax.f32 %v981_v54, %v988_v55  ;;  %v989_v29 = vrot.slane %v988_v55, 4  ;;  %v256_v32 = vrot.slane %v255_v28, 2 }
 0x1cd   :  { %v983_v33 = vmax.f32 %v981_v54, %v982_v30  ;;  %v250_v20 = vmax.f32 %v248_v27, %v249_v31 }
 0x1ce   :  { %1020 = vmax.xlane.f32.xlu0 %v1019_v56  ;;  %v990_v34 = vmax.f32 %v988_v55, %v989_v29  ;;  %v257_v35 = vmax.f32 %v255_v28, %v256_v32 }
 0x1cf   :  { %v984_v36 = vrot.slane %v983_v33, 2  ;;  %v251_v37 = vrot.slane %v250_v20, 1 }
 0x1d0   :  { %v991_v38 = vrot.slane %v990_v34, 2  ;;  %v258_v39 = vrot.slane %v257_v35, 1 }
 0x1d1   :  { %v985_v40 = vmax.f32 %v983_v33, %v984_v36  ;;  %v2288_v41 = vmax.f32 %v250_v20, %v251_v37 }
 0x1d2   :  { %v992_v42 = vmax.f32 %v990_v34, %v991_v38  ;;  %v2290_v19 = vmax.f32 %v257_v35, %v258_v39 }
 0x1d3   :  { %v986_v43 = vrot.slane %v985_v40, 1  ;;  %vm260_vm9 = vcmp.eq.f32.partialorder %v2246_v45, %v2288_v41 }
 0x1d4   :  { %v993_v44 = vrot.slane %v992_v42, 1  ;;  %vm261_vm10 = vcmp.eq.f32.partialorder %v2248_v46, %v2290_v19  ;;  %v262_v48 = vsel %vm260_vm9, %v2225_v16, 3 }
 0x1d5   :  { %v2296_v47 = vmax.f32 %v985_v40, %v986_v43  ;;  %v263_v49 = vsel %vm261_vm10, %v2225_v16, 3  ;;  %v264_v52 = vsel %vm245_vm0, %v262_v48, 2147483647 }
 0x1d6   :  { %v2300_v50 = vmax.f32 %v992_v42, %v993_v44  ;;  %v274_v54 = vsel %vm245_vm0, %v263_v49, 2147483647 }
 0x1d7   :  { %vm995_vm11 = vcmp.eq.f32.partialorder %v2254_v51, %v2296_v47  ;;  %v275_v55 = vrot.slane %v274_v54, 4 }
 0x1d8   :  { %vm996_vm12 = vcmp.eq.f32.partialorder %v2256_v53, %v2300_v50 }
 0x1d9   :  { %v998_v56 = vsel %vm996_vm12, %v2225_v16, 3  ;;  %vm276_vm14 = vcmp.lt.s32.totalorder %v274_v54, %v275_v55 }
 0x257   :  { %v286_v59 = vpop.xlane.xlu1 %285 }
 0x258   :  { %vm287_vm1 = vcmp.eq.f32.partialorder %v2246_v45, %v286_v59  ;;  %vm288_vm2 = vcmp.eq.f32.partialorder %v2248_v46, %v286_v59  ;;  %v997_v45 = vsel %vm995_vm11, %v2225_v16, 3  ;;  %v265_v46 = vrot.slane %v264_v52, 4 }
 0x259   :  { %v289_v60 = vsel %vm287_vm1, %v2263_v57, 256  ;;  %v290_v61 = vsel %vm288_vm2, %v2266_v58, 256  ;;  %v999_v59 = vsel %vm245_vm0, %v997_v45, 2147483647 }
 0x25a   :  { %v291_v62 = vsel %vm245_vm0, %v289_v60, 2147483647  ;;  %v292_v63 = vsel %vm245_vm0, %v290_v61, 2147483647  ;;  %vm266_vm13 = vcmp.lt.s32.totalorder %v264_v52, %v265_v46  ;;  %v1009_v60 = vsel %vm245_vm0, %v998_v56, 2147483647 }
 0x25b   :  { %vm293_vm3 = vcmp.lt.s32.totalorder %v291_v62, %v292_v63  ;;  %v1021_v1 = vpop.xlane.xlu0 %1020  ;;  %v267_v61 = vsel %vm266_vm13, %v264_v52, %v265_v46 }
 0x25c   :  { %vm1022_vm4 = vcmp.eq.f32.partialorder %v2254_v51, %v1021_v1  ;;  %vm1023_vm5 = vcmp.eq.f32.partialorder %v2256_v53, %v1021_v1  ;;  %v294_v15 = vsel %vm293_vm3, %v291_v62, %v292_v63  ;;  %v1000_v51 = vrot.slane %v999_v59, 4 }
 0x25d   :  { %v1024_v2 = vsel %vm1022_vm4, %v2263_v57, 256  ;;  %v1025_v3 = vsel %vm1023_vm5, %v2266_v58, 256  ;;  %v296_v4 = vshra.s32 %v294_v15, 16  ;;  %v295_v11 = vand.u32 65535, %v294_v15 }
 0x25e   :  { %v1026_v5 = vsel %vm245_vm0, %v1024_v2, 2147483647  ;;  %v1027_v6 = vsel %vm245_vm0, %v1025_v3, 2147483647  ;;  %v277_v62 = vsel %vm276_vm14, %v274_v54, %v275_v55  ;;  %v1010_v63 = vrot.slane %v1009_v60, 4 }
 0x25f   :  { %vm1028_vm6 = vcmp.lt.s32.totalorder %v1026_v5, %v1027_v6  ;;  %v298_v7 = vcvt.s32.f32 %v296_v4  ;;  %v297_v13 = vcvt.s32.f32 %v295_v11  ;;  %vm1001_vm15 = vcmp.lt.s32.totalorder %v999_v59, %v1000_v51 }
 0x260   :  { %v1029_v8 = vsel %vm1028_vm6, %v1026_v5, %v1027_v6  ;;  %v268_v1 = vrot.slane %v267_v61, 2  ;;  %v278_v15 = vrot.slane %v277_v62, 2  ;;  %vm1011_vm1 = vcmp.lt.s32.totalorder %v1009_v60, %v1010_v63 }
 0x261   :  { %299 = vmin.xlane.f32.xlu1 %v298_v7  ;;  %v1031_v9 = vshra.s32 %v1029_v8, 16  ;;  %v1030_v14 = vand.u32 65535, %v1029_v8  ;;  %v1002_v53 = vsel %vm1001_vm15, %v999_v59, %v1000_v51  ;;  %v1012_v2 = vsel %vm1011_vm1, %v1009_v60, %v1010_v63 }
 0x262   :  { %vm269_vm2 = vcmp.lt.s32.totalorder %v267_v61, %v268_v1  ;;  %vm279_vm3 = vcmp.lt.s32.totalorder %v277_v62, %v278_v15  ;;  %v1003_v3 = vrot.slane %v1002_v53, 2  ;;  %vm346_vm5 = vcmask 64512  }
 0x263   :  { %v1033_v10 = vcvt.s32.f32 %v1031_v9  ;;  %v1032_v21 = vcvt.s32.f32 %v1030_v14  ;;  %v270_v4 = vsel %vm269_vm2, %v267_v61, %v268_v1  ;;  %v280_v6 = vsel %vm279_vm3, %v277_v62, %v278_v15  ;;  %v345_v9 = vld [vmem:[#allocation2] sm:$0xff] }
 0x264   :  { %vm1004_vm4 = vcmp.lt.s32.totalorder %v1002_v53, %v1003_v3  ;;  %v271_v8 = vrot.slane %v270_v4, 1  ;;  %v1083_v20 = vsel %vm346_vm5, %v1081_v26, 0 }
 0x265   :  { %1034 = vmin.xlane.f32.xlu0 %v1033_v10  ;;  %v2333_v44 = vand.u32 4294901760, %v1083_v20 }
 0x267   :  { %v2347_v62 = vsub.f32 %v1083_v20, %v2333_v44 }
 0x2ee   :  { %v2280_v12 = vpop.xlane.xlu1 %299 }
 0x2ef   :  { %vm301_vm7 = vcmp.eq.f32.partialorder %v298_v7, %v2280_v12  ;;  %v306_v5 = vcvt.f32.s32 %v2280_v12  ;;  %v1013_v7 = vrot.slane %v1012_v2, 2 }
 0x2f0   :  { %v302_v17 = vsel %vm301_vm7, %v297_v13, inf  ;;  %v281_v13 = vrot.slane %v280_v6, 1  ;;  %vm272_vm7 = vcmp.lt.s32.totalorder %v270_v4, %v271_v8 }
 0x2f1   :  { %303 = vmin.xlane.f32.xlu1 %v302_v17  ;;  %v307_v14 = vshll.u32 %v306_v5, 16  ;;  %vm1014_vm6 = vcmp.lt.s32.totalorder %v1012_v2, %v1013_v7  ;;  %v273_v33 = vsel %vm272_vm7, %v270_v4, %v271_v8  ;;  %v1154_v8 = vand.u32 4294901760, %v2347_v62 }
 0x2f2   :  { %v2283_v18 = vpop.xlane.xlu0 %1034  ;;  %v1015_v28 = vsel %vm1014_vm6, %v1012_v2, %v1013_v7 }
 0x2f3   :  { %vm1036_vm8 = vcmp.eq.f32.partialorder %v1033_v10, %v2283_v18  ;;  %v1041_v10 = vcvt.f32.s32 %v2283_v18  ;;  %v1016_v40 = vrot.slane %v1015_v28, 1  ;;  %v1155_v26 = vsub.f32 %v2347_v62, %v1154_v8 }
 0x2f4   :  { %v1037_v22 = vsel %vm1036_vm8, %v1032_v21, inf  ;;  %v1005_v21 = vsel %vm1004_vm4, %v1002_v53, %v1003_v3  ;;  %vm282_vm8 = vcmp.lt.s32.totalorder %v280_v6, %v281_v13 }
 0x2f5   :  { %1038 = vmin.xlane.f32.xlu0 %v1037_v22  ;;  %v348_v22 = vsel %vm346_vm5, %v345_v9, 0  ;;  %v1042_v12 = vshll.u32 %v1041_v10, 16  ;;  %v1006_v30 = vrot.slane %v1005_v21, 1  ;;  %v283_v37 = vsel %vm282_vm8, %v280_v6, %v281_v13 }
 0x2f6   :  { %v2317_v31 = vand.u32 4294901760, %v348_v22  ;;  %vm2340_vm1 = vcmp.lt.s32.totalorder %v1015_v28, %v1016_v40 }
 0x2f7   :  { %vm2324_vm11 = vcmp.lt.s32.totalorder %v1005_v21, %v1006_v30  ;;  %v1018_v7 = vsel %vm2340_vm1, %v1015_v28, %v1016_v40 }
 0x2f8   :  { %v2331_v43 = vsub.f32 %v348_v22, %v2317_v31  ;;  %v1008_v61 = vsel %vm2324_vm11, %v1005_v21, %v1006_v30 }
 0x2fa   :  { %v419_v60 = vand.u32 4294901760, %v2331_v43 }
 0x2fc   :  { %v420_v6 = vsub.f32 %v2331_v43, %v419_v60 }
 0x37e   :  { %v304_v11 = vpop.xlane.xlu1 %303 }
 0x37f   :  { %v305_v17 = vcvt.f32.s32 %v304_v11 }
 0x381   :  { %v308_v25 = vadd.s32 %v307_v14, %v305_v17 }
 0x382   :  { %v1039_v27 = vpop.xlane.xlu0 %1038 }
 0x383   :  { %vm309_vm9 = vcmp.eq.s32.totalorder %v2263_v57, %v308_v25  ;;  %vm310_vm10 = vcmp.eq.s32.totalorder %v2266_v58, %v308_v25  ;;  %v1040_v18 = vcvt.f32.s32 %v1039_v27  ;;  %v421_v25 = vand.u32 4294901760, %v420_v6 }
 0x384   :  { %v311_v29 = vsel %vm309_vm9, %v2225_v16, 4294967295  ;;  %v312_v32 = vsel %vm310_vm10, %v2225_v16, 4294967295  ;;  %v2107_v27 = vmov 1.0  }
 0x385   :  { %v313_v34 = vsel %vm245_vm0, %v311_v29, 2147483648  ;;  %v323_v35 = vsel %vm245_vm0, %v312_v32, 2147483648  ;;  %v1043_v36 = vadd.s32 %v1042_v12, %v1040_v18 }
 0x386   :  { %v314_v38 = vrot.slane %v313_v34, 4  ;;  %v324_v39 = vrot.slane %v323_v35, 4 }
 0x387   :  { %vm1044_vm12 = vcmp.eq.s32.totalorder %v2263_v57, %v1043_v36  ;;  %vm1045_vm13 = vcmp.eq.s32.totalorder %v2266_v58, %v1043_v36 }
 0x388   :  { %vm315_vm14 = vcmp.gt.s32.totalorder %v313_v34, %v314_v38  ;;  %vm325_vm15 = vcmp.gt.s32.totalorder %v323_v35, %v324_v39  ;;  %v1046_v48 = vsel %vm1044_vm12, %v2225_v16, 4294967295  ;;  %v1047_v49 = vsel %vm1045_vm13, %v2225_v16, 4294967295 }
 0x389   :  { %v316_v52 = vsel %vm315_vm14, %v313_v34, %v314_v38  ;;  %v326_v54 = vsel %vm325_vm15, %v323_v35, %v324_v39  ;;  %v1048_v45 = vsel %vm245_vm0, %v1046_v48, 2147483648  ;;  %v1058_v46 = vsel %vm245_vm0, %v1047_v49, 2147483648 }
 0x38a   :  { %v317_v55 = vrot.slane %v316_v52, 2  ;;  %v327_v56 = vrot.slane %v326_v54, 2  ;;  %v1049_v58 = vrot.slane %v1048_v45, 4  ;;  %v1059_v59 = vrot.slane %v1058_v46, 4 }
 0x38b   :  { %v1156_v34 = vand.u32 4294901760, %v1155_v26 }
 0x38c   :  { %vm318_vm2 = vcmp.gt.s32.totalorder %v316_v52, %v317_v55  ;;  %vm328_vm3 = vcmp.gt.s32.totalorder %v326_v54, %v327_v56  ;;  %vm1050_vm4 = vcmp.gt.s32.totalorder %v1048_v45, %v1049_v58  ;;  %vm1060_vm0 = vcmp.gt.s32.totalorder %v1058_v46, %v1059_v59 }
 0x38d   :  { %v1051_v63 = vsel %vm1050_vm4, %v1048_v45, %v1049_v58  ;;  %v1061_v1 = vsel %vm1060_vm0, %v1058_v46, %v1059_v59  ;;  %v329_v15 = vsel %vm328_vm3, %v326_v54, %v327_v56  ;;  %v319_v53 = vsel %vm318_vm2, %v316_v52, %v317_v55 }
 0x38e   :  { %v1052_v2 = vrot.slane %v1051_v63, 2  ;;  %v1062_v3 = vrot.slane %v1061_v1, 2  ;;  %v330_v4 = vrot.slane %v329_v15, 1  ;;  %v320_v5 = vrot.slane %v319_v53, 1 }
 0x390   :  { %vm1053_vm5 = vcmp.gt.s32.totalorder %v1051_v63, %v1052_v2  ;;  %vm1063_vm6 = vcmp.gt.s32.totalorder %v1061_v1, %v1062_v3  ;;  %vm331_vm7 = vcmp.gt.s32.totalorder %v329_v15, %v330_v4  ;;  %vm321_vm8 = vcmp.gt.s32.totalorder %v319_v53, %v320_v5 }
 0x391   :  { %v2355_v9 = vsel %vm331_vm7, %v329_v15, %v330_v4  ;;  %v2357_v10 = vsel %vm321_vm8, %v319_v53, %v320_v5  ;;  %v1064_v11 = vsel %vm1063_vm6, %v1061_v1, %v1062_v3  ;;  %v1054_v13 = vsel %vm1053_vm5, %v1051_v63, %v1052_v2 }
 0x392   :  { %vm334_vm9 = vcmp.ge.s32.totalorder %v2355_v9, 0  ;;  %vm333_vm10 = vcmp.ge.s32.totalorder %v2357_v10, 0  ;;  %v1065_v14 = vrot.slane %v1064_v11, 1  ;;  %v1055_v17 = vrot.slane %v1054_v13, 1 }
 0x393   :  { %v2364_v21 = vsel %vm334_vm9, %v2355_v9, %v283_v37  ;;  %v2369_v22 = vsel %vm333_vm10, %v2357_v10, %v273_v33  ;;  %vm1664_vm6 = vcmask 1040384   ;;  %vm839_vm8 = vcmask 1043456  }
 0x394   :  { %vm340_vm11 = vcmp.eq.s32.totalorder %v2225_v16, %v2364_v21  ;;  %vm339_vm12 = vcmp.eq.s32.totalorder %v2225_v16, %v2369_v22  ;;  %vm1066_vm13 = vcmp.gt.s32.totalorder %v1064_v11, %v1065_v14  ;;  %vm1056_vm14 = vcmp.gt.s32.totalorder %v1054_v13, %v1055_v17 }
 0x395   :  { %v1830_v12 = vsel %vm340_vm11, 1.0, %v2106_v24  ;;  %1831 = vmatprep.subr.msk.mxu0 %vm340_vm11, %v2107_v27  ;;  %v1829_v28 = vsel %vm339_vm12, 1.0, %v2106_v24  ;;  %v2390_v30 = vsel %vm1066_vm13, %v1064_v11, %v1065_v14  ;;  %v2392_v18 = vsel %vm1056_vm14, %v1054_v13, %v1055_v17 }
 0x396   :  { %v429_v29 = vsub.f32 %v1830_v12, %v1830_v12  ;;  %1832 = vmatpush1.msk.msra.mxu0 %vm339_vm12, %v2107_v27  ;;  %v435_v32 = vsub.f32 %v1829_v28, %v1829_v28  ;;  %vm1069_vm15 = vcmp.ge.s32.totalorder %v2390_v30, 0  ;;  %vm1068_vm1 = vcmp.ge.s32.totalorder %v2392_v18, 0 }
 0x397   :  { %422 = vmatmul.mubr.f32.vlgmr.msra.gmra.mrb[0].mxu0 %v421_v25  ;;  %v1071_v33 = vsel %vm1069_vm15, %v2390_v30, %v1018_v7  ;;  %v1070_v20 = vsel %vm1068_vm1, %v2392_v18, %v1008_v61  ;;  %v2480_v61 = vld [vmem:[%s2630_s5 + $0x8] sm:$0xff] }
 0x398   :  { %vm1075_vm2 = vcmp.eq.s32.totalorder %v2225_v16, %v1071_v33  ;;  %vm1074_vm3 = vcmp.eq.s32.totalorder %v2225_v16, %v1070_v20  ;;  %v430_v35 = vand.u32 4294901760, %v429_v29  ;;  %v436_v36 = vand.u32 4294901760, %v435_v32  ;;  %502 = vmatprep.mubr.f32.mxu0 %v2106_v24 }
 0x399   :  { %v1839_v37 = vsel %vm1075_vm2, 1.0, %v2106_v24  ;;  %1840 = vmatprep.subr.msk.mxu1 %vm1075_vm2, %v2107_v27  ;;  %v1838_v38 = vsel %vm1074_vm3, 1.0, %v2106_v24 }
 0x39a   :  { %v1164_v39 = vsub.f32 %v1839_v37, %v1839_v37  ;;  %1841 = vmatpush1.msk.msra.mxu1 %vm1074_vm3, %v2107_v27  ;;  %v1170_v40 = vsub.f32 %v1838_v38, %v1838_v38  ;;  %v431_v42 = vsub.f32 %v429_v29, %v430_v35  ;;  %v437_v48 = vsub.f32 %v435_v32, %v436_v36 }
 0x39b   :  { %1157 = vmatmul.mubr.f32.vlgmr.msra.gmra.mrb[0].mxu1 %v1156_v34 }
 0x39c   :  { %v432_v49 = vand.u32 4294901760, %v431_v42  ;;  %v438_v52 = vand.u32 4294901760, %v437_v48  ;;  %v1165_v54 = vand.u32 4294901760, %v1164_v39  ;;  %v1171_v45 = vand.u32 4294901760, %v1170_v40  ;;  %1237 = vmatprep.mubr.f32.mxu1 %v2106_v24 }
 0x39e   :  { %433 = vmatprep.subr.mxu0 %v432_v49  ;;  %v1166_v46 = vsub.f32 %v1164_v39, %v1165_v54  ;;  %v1172_v55 = vsub.f32 %v1170_v40, %v1171_v45 }
 0x39f   :  { %439 = vmatpush1.msra.mxu0 %v438_v52 }
 0x3a0   :  { %504 = vmatmul.mubr.f32.vlgmr.msra.gmra.mrb[0].mxu0 %v2317_v31  ;;  %512 = vmatprep.subr.mxu0 %v429_v29  ;;  %v1167_v56 = vand.u32 4294901760, %v1166_v46  ;;  %v1173_v58 = vand.u32 4294901760, %v1172_v55 }
 0x3a1   :  { %515 = vmatpush1.msra.mxu0 %v435_v32  ;;  %578 = vmatprep.mubr.f32.mxu0 %v2106_v24 }
 0x3a2   :  { %1833 = vmatprep.subr.msk.mxu0 %vm340_vm11, %v2107_v27  ;;  %1168 = vmatprep.subr.mxu1 %v1167_v56 }
 0x3a3   :  { %1174 = vmatpush1.msra.mxu1 %v1173_v58 }
 0x3a4   :  { %1239 = vmatmul.mubr.f32.vlgmr.msra.gmra.mrb[0].mxu1 %v2333_v44  ;;  %1247 = vmatprep.subr.mxu1 %v1164_v39 }
 0x3a5   :  { %1250 = vmatpush1.msra.mxu1 %v1170_v40  ;;  %1313 = vmatprep.mubr.f32.mxu1 %v2106_v24 }
 0x3a6   :  { %1842 = vmatprep.subr.msk.mxu1 %vm1075_vm2, %v2107_v27 }
 0x3a8   :  { %581 = vmatmul.mubr.f32.vlgmr.msra.gmra.mrb[0].mxu0 %v2331_v43  ;;  %v2473_v43 = vld [vmem:[%s2630_s5] sm:$0xff] }
 0x3a9   :  { %1834 = vmatpush1.msk.msra.mxu0 %vm339_vm12, %v2107_v27  ;;  %653 = vmatprep.mubr.f32.mxu0 %v2106_v24  ;;  %v856_v59 = vrot.slane %v2473_v43, 4 }
 0x3aa   :  { %666 = vmatprep.subr.mxu0 %v430_v35 }
 0x3ac   :  { %1316 = vmatmul.mubr.f32.vlgmr.msra.gmra.mrb[0].mxu1 %v2347_v62  ;;  %v862_v62 = vrot.slane %v2480_v61, 4 }
 0x3ad   :  { %1843 = vmatpush1.msk.msra.mxu1 %vm1074_vm3, %v2107_v27  ;;  %1388 = vmatprep.mubr.f32.mxu1 %v2106_v24 }
 0x3ae   :  { %1401 = vmatprep.subr.mxu1 %v1165_v54  ;;  %v863_v53 = vmax.f32 %v2480_v61, %v862_v62 }
 0x3b0   :  { %657 = vmatmul.mubr.f32.vlgmr.msra.gmra.mrb[0].mxu0 %v419_v60  ;;  %v857_v60 = vmax.f32 %v2473_v43, %v856_v59  ;;  %v864_v5 = vrot.slane %v863_v53, 2 }
 0x3b1   :  { %670 = vmatpush1.msra.mxu0 %v436_v36  ;;  %733 = vmatprep.mubr.f32.mxu0 %v2106_v24 }
 0x3b2   :  { %1835 = vmatprep.subr.msk.mxu0 %vm340_vm11, %v2107_v27  ;;  %v858_v51 = vrot.slane %v857_v60, 2  ;;  %v865_v11 = vmax.f32 %v863_v53, %v864_v5 }
 0x3b4   :  { %1392 = vmatmul.mubr.f32.vlgmr.msra.gmra.mrb[0].mxu1 %v1154_v8  ;;  %v859_v63 = vmax.f32 %v857_v60, %v858_v51  ;;  %v866_v21 = vrot.slane %v865_v11, 1 }
 0x3b5   :  { %1405 = vmatpush1.msra.mxu1 %v1171_v45  ;;  %1468 = vmatprep.mubr.f32.mxu1 %v2106_v24 }
 0x3b6   :  { %1844 = vmatprep.subr.msk.mxu1 %vm1075_vm2, %v2107_v27  ;;  %v860_v2 = vrot.slane %v859_v63, 1  ;;  %v2502_v12 = vmax.f32 %v865_v11, %v866_v21  ;;  %v1072_v11 = vsel %vm1068_vm1, 1.0, %v2296_v47  ;;  %v2527_v21 = vcvt.s32.f32 %v2225_v16 }
 0x3b7   :  { %vm1550_vm5 = vcmp.lt.f32.partialorder %v1072_v11, 0.5  ;;  %vm1698_vm1 = vcmask 1045504  }
 0x3b8   :  { %735 = vmatmul.mubr.f32.vlgmr.msra.gmra.mrb[0].mxu0 %v2317_v31  ;;  %v2498_v6 = vmax.f32 %v859_v63, %v860_v2  ;;  %v869_v29 = vsub.f32 %v2480_v61, %v2502_v12  ;;  %v87_v2 = vld [vmem:[#allocation7] sm:$0xff] }
 0x3b9   :  { %1836 = vmatpush1.msk.msra.mxu0 %vm339_vm12, %v2107_v27  ;;  %807 = vmatprep.mubr.f32.mxu0 %v2106_v24 }
 0x3ba   :  { %v868_v13 = vsub.f32 %v2473_v43, %v2498_v6  ;;  %v872_v20 = vmul.f32 1.442695, %v869_v29 }
 0x3bc   :  { %1470 = vmatmul.mubr.f32.vlgmr.msra.gmra.mrb[0].mxu1 %v2333_v44  ;;  %v870_v22 = vmul.f32 1.442695, %v868_v13  ;;  %v820_v13 = vcombine.high %v87_v2, %v87_v2 }
 0x3bd   :  { %1845 = vmatpush1.msk.msra.mxu1 %vm1074_vm3, %v2107_v27  ;;  %1542 = vmatprep.mubr.f32.mxu1 %v2106_v24 }
 0x3be   :  { %1934 = vpow2.f32 %v870_v22 }
 0x3bf   :  { %1936 = vpow2.f32 %v872_v20 }
 0x3c0   :  { %809 = vmatmul.mubr.f32.vlgmr.msra.gmra.mrb[0].mxu0 %v2317_v31  ;;  %v2485_v31 = vld [vmem:[%s2630_s5 + $0x10] sm:$0xff] }
 0x3c1   :  { %v1586_v1 = vrot.slane %v2485_v31, 4 }
 0x3c3   :  { %v1587_v3 = vmax.f32 %v2485_v31, %v1586_v1 }
 0x3c4   :  { %1544 = vmatmul.mubr.f32.vlgmr.msra.gmra.mrb[0].mxu1 %v2333_v44  ;;  %v2490_v44 = vld [vmem:[%s2630_s5 + $0x18] sm:$0xff]  ;;  %s2090_s5 = smov 0  }
 0x3c5   :  { %v1592_v15 = vrot.slane %v2490_v44, 4  ;;  %v1588_v7 = vrot.slane %v1587_v3, 2 }
 0x3c7   :  { %v1593_v4 = vmax.f32 %v2490_v44, %v1592_v15  ;;  %v1589_v14 = vmax.f32 %v1587_v3, %v1588_v7  ;;  %v89_v7 = vld [vmem:[#allocation7 + $0x8] sm:$0xff] }
 0x3c8   :  { %v1935_v36 = vpop.eup %1934  ;;  %v825_v22 = vcombine.high %v89_v7, %v89_v7 }
 0x3c9   :  { %v1594_v8 = vrot.slane %v1593_v4, 2  ;;  %v1590_v25 = vrot.slane %v1589_v14, 1  ;;  %v874_v37 = vrot.slane %v1935_v36, 4  ;;  %v1937_v39 = vpop.eup %1936 }
 0x3ca   :  { %v880_v49 = vrot.slane %v1937_v39, 4 }
 0x3cb   :  { %v1595_v17 = vmax.f32 %v1593_v4, %v1594_v8  ;;  %v2504_v27 = vmax.f32 %v1589_v14, %v1590_v25  ;;  %v875_v38 = vadd.f32 %v1935_v36, %v874_v37  ;;  %v337_v4 = vsel %vm333_vm10, 1.0, %v2288_v41  ;;  %v829_v36 = vld [vmem:[#allocation8] sm:$0xff] }
 0x3cc   :  { %v881_v46 = vadd.f32 %v1937_v39, %v880_v49  ;;  %v338_v8 = vsel %vm334_vm9, 1.0, %v2290_v19  ;;  %vm815_vm4 = vcmp.lt.f32.partialorder %v337_v4, 0.5 }
 0x3cd   :  { %v1596_v26 = vrot.slane %v1595_v17, 1  ;;  %v1598_v32 = vsub.f32 %v2485_v31, %v2504_v27  ;;  %v876_v40 = vrot.slane %v875_v38, 2  ;;  %vm816_vm0 = vcmp.lt.f32.partialorder %v338_v8, 0.5 }
 0x3ce   :  { %v882_v59 = vrot.slane %v881_v46, 2 }
 0x3cf   :  { %v2506_v28 = vmax.f32 %v1595_v17, %v1596_v26  ;;  %v1600_v34 = vmul.f32 1.442695, %v1598_v32  ;;  %v877_v52 = vadd.f32 %v876_v40, %v875_v38  ;;  %v1073_v17 = vsel %vm1069_vm15, 1.0, %v2300_v50 }
 0x3d0   :  { %v883_v63 = vadd.f32 %v882_v59, %v881_v46  ;;  %vm1551_vm7 = vcmp.lt.f32.partialorder %v1073_v17, 0.5  ;;  %vm1693_vm15 = vcmask 1041408  }
 0x3d1   :  { %v1599_v33 = vsub.f32 %v2490_v44, %v2506_v28  ;;  %1938 = vpow2.f32 %v1600_v34  ;;  %v878_v55 = vrot.slane %v877_v52, 1 }
 0x3d2   :  { %v884_v53 = vrot.slane %v883_v63, 1 }
 0x3d3   :  { %v1602_v35 = vmul.f32 1.442695, %v1599_v33  ;;  %v879_v60 = vadd.f32 %v878_v55, %v877_v52 }
 0x3d4   :  { %v885_v14 = vadd.f32 %v884_v53, %v883_v63  ;;  %v1559_v63 = vld [vmem:[#allocation8 + $0x8] sm:$0xff] }
 0x3d5   :  { %1940 = vpow2.f32 %v1602_v35 }
 0x3d6   :  { %1942 = vlog2.f32 %v879_v60 }
 0x3d7   :  { %1944 = vlog2.f32 %v885_v14 }
 0x3db   :  { %v1939_v42 = vpop.eup %1938 }
 0x3dc   :  { %v1604_v54 = vrot.slane %v1939_v42, 4 }
 0x3de   :  { %v1605_v56 = vadd.f32 %v1939_v42, %v1604_v54 }
 0x3df   :  { %v1941_v48 = vpop.eup %1940 }
 0x3e0   :  { %v1610_v45 = vrot.slane %v1941_v48, 4  ;;  %v1606_v51 = vrot.slane %v1605_v56, 2  ;;  %v1943_v9 = vpop.eup %1942 }
 0x3e1   :  { %v2534_v32 = vmul.f32 0.6931472, %v1943_v9  ;;  %v1945_v8 = vpop.eup %1944 }
 0x3e2   :  { %v1611_v58 = vadd.f32 %v1941_v48, %v1610_v45  ;;  %v1607_v1 = vadd.f32 %v1606_v51, %v1605_v56 }
 0x3e4   :  { %v1612_v62 = vrot.slane %v1611_v58, 2  ;;  %v1608_v3 = vrot.slane %v1607_v1, 1 }
 0x3e6   :  { %v1613_v15 = vadd.f32 %v1612_v62, %v1611_v58  ;;  %v1609_v41 = vadd.f32 %v1608_v3, %v1607_v1 }
 0x3e8   :  { %v1614_v5 = vrot.slane %v1613_v15, 1  ;;  %1946 = vlog2.f32 %v1609_v41 }
 0x3ea   :  { %v1615_v19 = vadd.f32 %v1614_v5, %v1613_v15 }
 0x3ec   :  { %1948 = vlog2.f32 %v1615_v19 }
 0x3f2   :  { %v1947_v14 = vpop.eup %1946 }
 0x3f6   :  { %v1949_v19 = vpop.eup %1948 }
 0x493   :  { %v810_v10 = vpop.f32.mrb[0].mxu0 }
 0x494   :  { %v817_v25 = vsel %vm815_vm4, 0.0, %v810_v10  ;;  %v822_v18 = vmul.f32 %v810_v10, %v87_v2  ;;  %v812_v47 = vpop.f32.mrb[1].mxu0 }
 0x495   :  { %v895_v26 = vrot.slane %v817_v25, %v2234_v23  ;;  %v2530_v30 = vsel %vm816_vm0, 0.0, %v812_v47  ;;  %v823_v50 = vmul.f32 %v820_v13, %v812_v47  ;;  %v1654_v35 = vrot.slane %v817_v25, 4 }
 0x496   :  { %v827_v16 = vadd.f32 %v822_v18, %v89_v7  ;;  %v899_v29 = vrot.slane %v2530_v30, %v2234_v23  ;;  %v1655_v51 = vrot.slane %v2530_v30, 4 }
 0x497   :  { %v900_v33 = vsub.f32 %v2527_v21, %v895_v26  ;;  %v828_v20 = vadd.f32 %v825_v22, %v823_v50  ;;  %v1545_v34 = vpop.f32.mrb[0].mxu1 }
 0x498   :  { %v901_v37 = vsub.f32 %v2527_v21, %v899_v29  ;;  %v1552_v38 = vsel %vm1550_vm5, 0.0, %v1545_v34  ;;  %v1554_v39 = vmul.f32 %v1545_v34, %v87_v2  ;;  %v1547_v40 = vpop.f32.mrb[1].mxu1  ;;  %v1617_v34 = vmul.f32 0.6931472, %v1947_v14 }
 0x499   :  { %v902_v42 = vand.u32 2147483647, %v900_v33  ;;  %v832_v48 = vcombine.low %v827_v16, %v828_v20  ;;  %v1625_v49 = vrot.slane %v1552_v38, %v2234_v23  ;;  %v1660_v52 = vrot.slane %v1552_v38, 3 }
 0x49a   :  { %v903_v54 = vand.u32 2147483647, %v901_v37  ;;  %v1556_v45 = vadd.f32 %v1554_v39, %v89_v7  ;;  %v1553_v46 = vsel %vm1551_vm7, 0.0, %v1547_v40  ;;  %v1555_v55 = vmul.f32 %v1547_v40, %v820_v13 }
 0x49b   :  { %vm904_vm9 = vcmp.lt.f32.partialorder %v902_v42, 0.5  ;;  %v834_v56 = vsub.f32 %v829_v36, %v832_v48  ;;  %v1630_v58 = vsub.f32 %v2527_v21, %v1625_v49  ;;  %v2543_v59 = vsel %vm1664_vm6, %v1654_v35, %v1660_v52 }
 0x49c   :  { %v906_v60 = vsel %vm904_vm9, %v2473_v43, 0.0  ;;  %vm905_vm10 = vcmp.lt.f32.partialorder %v903_v54, 0.5  ;;  %v1557_v62 = vadd.f32 %v1555_v55, %v825_v22  ;;  %v1629_v5 = vrot.slane %v1553_v46, %v2234_v23 }
 0x49d   :  { %v908_v1 = vrot.slane %v906_v60, 4  ;;  %v835_v15 = vand.u32 2147483647, %v834_v56  ;;  %v907_v53 = vsel %vm905_vm10, %v2480_v61, 0.0  ;;  %v1632_v2 = vand.u32 2147483647, %v1630_v58 }
 0x49e   :  { %v914_v3 = vrot.slane %v907_v53, 4  ;;  %v1562_v4 = vcombine.low %v1556_v45, %v1557_v62  ;;  %v1661_v7 = vrot.slane %v1553_v46, 3  ;;  %v1631_v23 = vsub.f32 %v2527_v21, %v1629_v5 }
 0x49f   :  { %v909_v11 = vadd.f32 %v908_v1, %v906_v60  ;;  %v837_v13 = vcombine.high %v835_v15, %v835_v15  ;;  %v840_v43 = vsel %vm839_vm8, %v835_v15, 0.0  ;;  %vm1634_vm11 = vcmp.lt.f32.partialorder %v1632_v2, 0.5 }
 0x4a0   :  { %v841_v17 = vrot.slane %v840_v43, 4  ;;  %v915_v41 = vadd.f32 %v914_v3, %v907_v53  ;;  %v1636_v10 = vsel %vm1634_vm11, %v2485_v31, 0.0  ;;  %v1564_v22 = vsub.f32 %v1559_v63, %v1562_v4 }
 0x4a1   :  { %v910_v61 = vrot.slane %v909_v11, 2  ;;  %v847_v9 = vsel %vm839_vm8, %v837_v13, 0.0  ;;  %v1638_v25 = vrot.slane %v1636_v10, 4  ;;  %v1633_v29 = vand.u32 2147483647, %v1631_v23 }
 0x4a2   :  { %v842_v18 = vadd.f32 %v841_v17, %v840_v43  ;;  %v848_v47 = vrot.slane %v847_v9, 4  ;;  %v916_v26 = vrot.slane %v915_v41, 2  ;;  %v1565_v30 = vand.u32 2147483647, %v1564_v22 }
 0x4a3   :  { %v911_v50 = vadd.f32 %v910_v61, %v909_v11  ;;  %v1639_v16 = vadd.f32 %v1638_v25, %v1636_v10  ;;  %v2554_v33 = vsel %vm1664_vm6, %v1655_v51, %v1661_v7  ;;  %vm1635_vm12 = vcmp.lt.f32.partialorder %v1633_v29, 0.5 }
 0x4a4   :  { %v843_v20 = vrot.slane %v842_v18, 2  ;;  %v849_v31 = vadd.f32 %v848_v47, %v847_v9  ;;  %v1567_v35 = vcombine.high %v1565_v30, %v1565_v30  ;;  %v1569_v38 = vsel %vm839_vm8, %v1565_v30, 0.0 }
 0x4a5   :  { %v912_v36 = vrot.slane %v911_v50, 1  ;;  %v1640_v37 = vrot.slane %v1639_v16, 2  ;;  %v917_v39 = vadd.f32 %v916_v26, %v915_v41  ;;  %v1570_v40 = vrot.slane %v1569_v38, 4 }
 0x4a6   :  { %v850_v21 = vrot.slane %v849_v31, 2  ;;  %v1576_v48 = vsel %vm839_vm8, %v1567_v35, 0.0  ;;  %v1637_v49 = vsel %vm1635_vm12, %v2490_v44, 0.0  ;;  %v890_v52 = vadd.f32 %v2534_v32, %v2498_v6 }
 0x4a7   :  { %v1641_v42 = vadd.f32 %v1640_v37, %v1639_v16  ;;  %v844_v54 = vadd.f32 %v843_v20, %v842_v18  ;;  %v1620_v45 = vadd.f32 %v1617_v34, %v2504_v27  ;;  %v1571_v46 = vadd.f32 %v1570_v40, %v1569_v38 }
 0x4a8   :  { %v913_v55 = vadd.f32 %v912_v36, %v911_v50  ;;  %v1577_v58 = vrot.slane %v1576_v48, 4  ;;  %v1644_v60 = vrot.slane %v1637_v49, 4  ;;  %v851_v51 = vadd.f32 %v850_v21, %v849_v31 }
 0x4a9   :  { %v1642_v56 = vrot.slane %v1641_v42, 1  ;;  %v889_v62 = vmul.f32 0.6931472, %v1945_v8  ;;  %v918_v63 = vrot.slane %v917_v39, 1  ;;  %v1572_v1 = vrot.slane %v1571_v46, 2 }
 0x4aa   :  { %v1578_v53 = vadd.f32 %v1577_v58, %v1576_v48  ;;  %v1645_v2 = vadd.f32 %v1644_v60, %v1637_v49  ;;  %v845_v3 = vrot.slane %v844_v54, 1  ;;  %vm1671_vm13 = vcmp.gt.f32.partialorder %v2543_v59, 0.5 }
 0x4ab   :  { %v1643_v15 = vadd.f32 %v1642_v56, %v1641_v42  ;;  %v1573_v44 = vadd.f32 %v1572_v1, %v1571_v46  ;;  %v1619_v6 = vmul.f32 0.6931472, %v1949_v19  ;;  %v920_v32 = vsub.f32 %v890_v52, %v913_v55 }
 0x4ac   :  { %v1579_v27 = vrot.slane %v1578_v53, 2  ;;  %v1646_v5 = vrot.slane %v1645_v2, 2  ;;  %v852_v7 = vrot.slane %v851_v51, 1  ;;  %v891_v11 = vadd.f32 %v889_v62, %v2502_v12 }
 0x4ad   :  { %v1650_v4 = vsub.f32 %v1620_v45, %v1643_v15  ;;  %v919_v13 = vadd.f32 %v918_v63, %v917_v39  ;;  %v1574_v43 = vrot.slane %v1573_v44, 1  ;;  %v1848_v41 = vsel %vm1671_vm13, 1.0, %v2106_v24 }
 0x4ae   :  { %v1580_v14 = vadd.f32 %v1579_v27, %v1578_v53  ;;  %v1647_v17 = vadd.f32 %v1646_v5, %v1645_v2  ;;  %v846_v10 = vadd.f32 %v845_v3, %v844_v54  ;;  %v1621_v12 = vadd.f32 %v1619_v6, %v2506_v28 }
 0x4af   :  { %v1669_v8 = vsel %vm1664_vm6, %v920_v32, %v1650_v4  ;;  %v1575_v19 = vadd.f32 %v1574_v43, %v1573_v44  ;;  %vm1672_vm14 = vcmp.gt.f32.partialorder %v2554_v33, 0.5  ;;  %v853_v18 = vadd.f32 %v852_v7, %v851_v51 }
 0x4b0   :  { %v2570_v22 = vsel %vm1671_vm13, 0.0, %v1669_v8  ;;  %v1679_v61 = vmul.f32 %v1848_v41, %v1669_v8  ;;  %v1581_v9 = vrot.slane %v1580_v14, 1  ;;  %v1648_v25 = vrot.slane %v1647_v17, 1 }
 0x4b1   :  { %v1667_v23 = vsel %vm1664_vm6, %v846_v10, %v1575_v19  ;;  %v921_v50 = vsub.f32 %v891_v11, %v919_v13  ;;  %v1849_v29 = vsel %vm1672_vm14, 1.0, %v2106_v24  ;;  %v2082_v33 = vmov 1073741824  }
 0x4b2   :  { %v1582_v47 = vadd.f32 %v1581_v9, %v1580_v14  ;;  %v1649_v26 = vadd.f32 %v1648_v25, %v1647_v17  ;;  %v1677_v30 = vmul.f32 %v1848_v41, %v1667_v23  ;;  %v1689_v31 = vrot.slane %v1679_v61, 4 }
 0x4b3   :  { %v2086_v55 = vmov 0  }
 0x4b4   :  { %v1651_v16 = vsub.f32 %v1621_v12, %v1649_v26  ;;  %v1668_v59 = vsel %vm1664_vm6, %v853_v18, %v1582_v47  ;;  %v1683_v20 = vrot.slane %v1677_v30, 6 }
 0x4b5   :  { %v1678_v28 = vmul.f32 %v1849_v29, %v1668_v59 }
 0x4b6   :  { %v1670_v34 = vsel %vm1664_vm6, %v921_v50, %v1651_v16  ;;  %v1694_v35 = vsel %vm1693_vm15, %v1848_v41, %v1683_v20 }
 0x4b7   :  { %v1684_v36 = vrot.slane %v1678_v28, 6  ;;  %v1705_v37 = vsel %vm1672_vm14, 0.0, %v1670_v34  ;;  %v1680_v38 = vmul.f32 %v1849_v29, %v1670_v34  ;;  %v1696_v21 = vsel %vm839_vm8, %v1694_v35, %v1689_v31 }
 0x4b8   :  { %v1699_v48 = vsel %vm1698_vm1, %v1696_v21, 0.0 }
 0x4b9   :  { %v1690_v39 = vrot.slane %v1680_v38, 4  ;;  %v1695_v40 = vsel %vm1693_vm15, %v1849_v29, %v1684_v36 }
 0x4bb   :  { %v1697_v42 = vsel %vm839_vm8, %v1695_v40, %v1690_v39 }
 0x4bc   :  { %v1700_v49 = vsel %vm1698_vm1, %v1697_v42, 0.0 }
 0x4bd   :  { %v1701_v52 = vadd.f32 %v1700_v49, %v1699_v48 }
 0x4bf   :  { %1702 = vadd.xlane.f32.xlu1 %v1701_v52 }
 0x54c   :  { %v2586_v54 = vpop.xlane.xlu1 %1702 }
 0x54d   :  { %v1706_v45 = vmul.f32 3.0, %v2586_v54 }
 0x54f   :  { %v1707_v46 = vmin.f32 %v1706_v45, 256.0 }
 0x550 LB: > { %v1718_v56 = vor.u32 %v2084_v33, %v2088_v55  ;;  %v1732_v33 = vshra.s32 %v2084_v33, 1   ;;  %v2108_v58 = vmov 0.0   ;;  %s1715_s5 = sadd.s32 1, %s2092_s5   ;;  %s2092_s5 = sphi %s2090_s5, %s1715_s5   ;;  %v2088_v55 = vphi %v2086_v55, %v2087_v55   ;;  %v2084_v33 = vphi %v2082_v33, %v1732_v33  }
 0x551   : > { %p1712_p4 = scmp.ge.s32.totalorder %s1715_s5, 31  }
 0x552   : > { %vm1719_vm2 = vcmp.ge.s32.totalorder %v2570_v22, %v1718_v56  ;;  %vm1720_vm3 = vcmp.ge.s32.totalorder %v1705_v37, %v1718_v56  ;;  %1950 = vset.pattern.permute.xlu1 (%p1712_p4), %v2100_v0  ;;  %1951 = vset.pattern.permute.xlu0 (%p1712_p4), %v2100_v0  ;;  %vm1763_vm9 = vcmp.gt.f32.partialorder (%p1712_p4), %v1707_v46, 0.5  ;;  %vm1774_vm10 = vcmp.eq.s32.totalorder (%p1712_p4), %v2263_v57, 0  ;;  %s2109_s8 = smov (%p1712_p4), [#allocation10]  }
 0x553   : > { %v1850_v60 = vsel %vm1719_vm2, 1.0, %v2108_v58  ;;  %v1851_v51 = vsel %vm1720_vm3, 1.0, %v2108_v58  ;;  %vm1776_vm11 = vcmp.eq.s32.totalorder (%p1712_p4), %v2263_v57, 1  ;;  %vm1793_vm12 = vcmp.eq.s32.totalorder (%p1712_p4), %v2263_v57, 3  ;;  %s1806_s9 = sshll.u32 (%p1712_p4), %s2109_s8, 4  ;;  %s1807_s9 = int_to_ptr.vmem [resolvable:$true] %s1806_s9 }
 0x554   : > { %v1725_v62 = vsel %vm1693_vm15, %v1850_v60, 0.0  ;;  %v1726_v63 = vsel %vm1693_vm15, %v1851_v51, 0.0  ;;  %v1775_v18 = vsel (%p1712_p4), %vm1774_vm10, %v2586_v54, 0.0  ;;  %v1794_v26 = vsel (%p1712_p4), %vm1793_vm12, %v2586_v54, 0.0  ;;  %s2040_s1 = scalar_lea.vmem (%p1712_p4), %s1807_s9, 32  ;;  %p2045_p6 = scmp.lt.s32.totalorder (%p1712_p4), %s1807_s9, %s1807_s9 }
 0x555   : > { %v1727_v1 = vadd.f32 %v1726_v63, %v1725_v62  ;;  %v1796_v59 = vrot.slane (%p1712_p4), %v1794_v26, 4  ;;  %p2041_p5 = scmp.ne.s32.totalorder (%p1712_p4), %s1807_s9, %s2040_s1  ;;  %p2046_p7 = scmp.lt.s32.totalorder (%p1712_p4), %s2040_s1, %s2040_s1 }
 0x557   : > { %1728 = vadd.xlane.f32.xlu0 %v1727_v1  ;;  %p2047_p8 = por (%p1712_p4), %p2046_p7, %p2045_p6 }
 0x559   :  { %p2048_p9 = pnand (%p1712_p4), %p2047_p8, %p2041_p5 }
 0x5e1   :  { %1714 = sbr.rel (!%p1712_p4) target bundleno = 1360 (0x550), region = 72 }
 0x5e4   : > { %v1729_v15 = vpop.xlane.xlu0 %1728 }
 0x5e5   : > { %vm1730_vm4 = vcmp.ge.f32.partialorder %v1729_v15, %v1707_v46 }
 0x5e6   : > { %v1731_v53 = vsel %vm1730_vm4, %v1718_v56, %v2088_v55  }
 0x5e7   : > { %v2087_v55 = vmov %v1731_v53   ;;  %vm1733_vm0 = vcmp.gt.s32.totalorder (%p1712_p4), %v2570_v22, %v1731_v53  ;;  %vm1734_vm5 = vcmp.gt.s32.totalorder (%p1712_p4), %v1705_v37, %v1731_v53  ;;  %vm1735_vm6 = vcmp.eq.s32.totalorder (%p1712_p4), %v2570_v22, %v1731_v53 }
 0x5e8   :  { %vm1736_vm7 = vcmp.eq.s32.totalorder %v1705_v37, %v1731_v53  ;;  %v1852_v2 = vsel %vm1733_vm0, 1.0, %v2106_v24  ;;  %v1853_v3 = vsel %vm1734_vm5, 1.0, %v2106_v24  ;;  %v1748_v44 = vsel %vm1733_vm0, %v2570_v22, 0.0 }
 0x5e9   :  { %v1749_v6 = vsel %vm1734_vm5, %v1705_v37, 0.0  ;;  %v1752_v32 = vrot.slane %v1748_v44, 6  ;;  %v1737_v27 = vsel %vm1735_vm6, %v2570_v22, 0.0  ;;  %v1738_v5 = vsel %vm1736_vm7, %v1705_v37, 0.0 }
 0x5ea   :  { %v1753_v4 = vrot.slane %v1749_v6, 6  ;;  %v1739_v24 = vsel %vm1693_vm15, %v1737_v27, -inf  ;;  %v1740_v8 = vsel %vm1693_vm15, %v1738_v5, -inf }
 0x5eb   :  { %v1756_v7 = vsel %vm1693_vm15, %v1852_v2, %v1752_v32  ;;  %v1741_v0 = vmax.f32 %v1739_v24, %v1740_v8 }
 0x5ec   :  { %v1757_v11 = vsel %vm1693_vm15, %v1853_v3, %v1753_v4  ;;  %v1758_v13 = vsel %vm839_vm8, %v1756_v7, 0.0 }
 0x5ed   :  { %v1759_v43 = vsel %vm839_vm8, %v1757_v11, 0.0  ;;  %vm1787_vm8 = vcmp.eq.s32.totalorder %v2263_v57, 2 }
 0x5ee   :  { %v1760_v14 = vadd.f32 %v1759_v43, %v1758_v13  ;;  %v1788_v25 = vsel %vm1787_vm8, %v2586_v54, 0.0 }
 0x5ef   :  { %v1790_v50 = vrot.slane %v1788_v25, 6 }
 0x5f0   :  { %1761 = vadd.xlane.f32.xlu0 %v1760_v14 }
 0x5f4   :  { %1742 = vmax.xlane.f32.xlu0 %v1741_v0 }
 0x67d   :  { %v1762_v17 = vpop.xlane.xlu0 %1761 }
 0x67e   :  { %v1764_v41 = vsub.f32 %v1707_v46, %v1762_v17 }
 0x681   :  { %v1743_v10 = vpop.xlane.xlu0 %1742 }
 0x682   :  { %v1765_v22 = vmul.f32 %v1764_v41, %v1743_v10 }
 0x684   :  { %v1767_v19 = vrot.slane %v1765_v22, 6 }
 0x686   :  { %v1769_v61 = vadd.f32 %v1767_v19, %v1762_v17 }
 0x688   :  { %v1771_v9 = vrot.slane %v1769_v61, 2 }
 0x68a   :  { %v1773_v12 = vsel %vm1763_vm9, %v1771_v9, 0.0 }
 0x68b   :  { %1779 = vperm.xlu1 %1950, %v1773_v12  }
 0x70a   :  { %v1780_v23 = vpop.permute.xlu1 %1779 }
 0x70b   :  { %v1782_v47 = vsel %vm1776_vm11, %v1780_v23, 0.0 }
 0x70c   :  { %v1784_v30 = vrot.slane %v1782_v47, 4 }
 0x70e   :  { %v1786_v16 = vadd.f32 %v1784_v30, %v1775_v18 }
 0x710   :  { %v1792_v29 = vadd.f32 %v1790_v50, %v1786_v16 }
 0x712   :  { %v1798_v20 = vadd.f32 %v1796_v59, %v1792_v29 }
 0x714   :  { %1799 = vst [vmem:[#allocation10 - $0x4] sm:$0x30] %v1798_v20 }
 0x715   :  { %2051 = shalt.err (!%p2048_p9)
}
 0x716   :  { %s2052_s11 = scalar_lea.hbm %s2631_s6, 32 }
 0x717   :  { %p2053_p10 = scmp.ne.s32.totalorder %s2631_s6, %s2052_s11  ;;  %p2056_p11 = scmp.lt.u32.totalorder %s2052_s11, %s2631_s6 }
 0x719   :  { %p2058_p12 = pnand %p2056_p11, %p2053_p10 }
 0x71b   :  { %2061 = shalt.err (!%p2058_p12)
}
 0x71c   :  { %1809 = dma.vmem_to_hbm [thread:$0]  %s1807_s9, 32, %s2631_s6, [#allocation4]  }
 0x71d   :  { %2080 = dma.done.wait [#allocation4], 32  }
 0x71e   :  { %2081 = vsyncadd [#allocation4], 4294967264 }
 0x71f   :  { %1813 = vsyncpa [#allocation3], 1 }
 0x720   :  { %1814 = vsyncpa [#allocation6], 1 }
 0x721   :  { %1815 = vsyncpa [#allocation9], 1 }
 0x722   :  { %1816 = vsyncpa [#allocation4], 1 }

</bundles_post_ra>
